<compile_context>
chip_gen: v7x
topology: tpu7x:2x2x1
jax: 0.10.0
libtpu: 0.0.40
codegen_flags: <defaults>
</compile_context>

<pallas_src>
import functools

import jax
import jax.numpy as jnp
from jax.experimental import pallas as pl
from jax.experimental.pallas import tpu as pltpu

EPS = 1e-5                        # PyTorch BatchNorm1d default eps
_VMEM_LIMIT = 40 * 1024 * 1024    # safe scoped limit on v5e/v6e (128 MiB) and v7x (64 MiB)
_VMEM_BUDGET = 16 * 1024 * 1024   # budget for batch-tile-dependent buffers


def _round_up(x, m):
    return (x + m - 1) // m * m


# ------------------------------ Pallas kernel -------------------------------

def _bn_relu_pool(acc_e, acc_o, s_ref, t_ref):
    """Folded BatchNorm + ReLU on both pooling phases, then MaxPool1d(2,2)."""
    s = s_ref[...]
    t = t_ref[...]
    ye = jnp.maximum(acc_e * s + t, 0.0)
    yo = jnp.maximum(acc_o * s + t, 0.0)
    return jnp.maximum(ye, yo)


def _fused_kernel(tb, length, xp_ref, wc1_ref, s1_ref, t1_ref,
                  wc2_ref, s2_ref, t2_ref, wc3_ref, s3_ref, t3_ref,
                  wf1_ref, s4_ref, t4_ref, wf2_ref, s5_ref, t5_ref,
                  wf3_ref, b3_ref, o_ref, a1_ref, a2_ref):
    """Whole forward pass for one batch tile of `tb` samples.

    xp_ref : (tb, L, 8)   stage-1 tap patch (taps in lanes, 5 used).
    wc*_ref: conv weights (taps, Cin, Cout) layouts; s*/t*: folded BN.
    wf1_ref: (L//8, 128, 2H) fc1 weight split per conv position (channel-last
             flatten order absorbed); wf2/wf3: (2H, H), (H, NCP).
    o_ref  : (tb, NCP) f32 logits (lane-dense, NCP = 128-padded num_classes).
    a1_ref : (tb, L//2 + 2, 32) f32 scratch  (stage-1 output + pad rows).
    a2_ref : (tb, L//4 + 2, 64) f32 scratch  (stage-2 output + pad rows).
    """
    l2, l4, l8 = length // 2, length // 4, length // 8
    bf16 = jnp.bfloat16
    f32 = jnp.float32

    # ---- stage 1: conv1(K=5, Cin=1) + bn1 + relu + pool(2,2) ---------------
    # Even/odd pooling phases read stride-2 rows of the tap patch; a single
    # (rows, 8) @ (8, 32) MXU matmul covers all 5 taps per phase.
    w1 = wc1_ref[...]                                              # (8, 32)
    pe = xp_ref[:, pl.ds(0, l2, stride=2), :].reshape(tb * l2, 8).astype(bf16)
    po = xp_ref[:, pl.ds(1, l2, stride=2), :].reshape(tb * l2, 8).astype(bf16)
    acc_e = jnp.dot(pe, w1, preferred_element_type=f32)
    acc_o = jnp.dot(po, w1, preferred_element_type=f32)
    y1 = _bn_relu_pool(acc_e, acc_o, s1_ref, t1_ref)               # (tb*l2, 32)
    a1_ref[:, 0:1, :] = jnp.zeros((tb, 1, 32), f32)                # pad row
    a1_ref[:, l2 + 1:l2 + 2, :] = jnp.zeros((tb, 1, 32), f32)      # pad row
    a1_ref[:, 1:l2 + 1, :] = y1.reshape(tb, l2, 32)

    # ---- stage 2: conv2(K=3) + bn2 + relu + pool(2,2) ----------------------
    acc_e = jnp.zeros((tb * l4, 64), f32)
    acc_o = jnp.zeros((tb * l4, 64), f32)
    for k in range(3):                                             # static unroll
        wk = wc2_ref[k]                                            # (32, 64)
        se = a1_ref[:, pl.ds(k, l4, stride=2), :].reshape(tb * l4, 32).astype(bf16)
        so = a1_ref[:, pl.ds(k + 1, l4, stride=2), :].reshape(tb * l4, 32).astype(bf16)
        acc_e = acc_e + jnp.dot(se, wk, preferred_element_type=f32)
        acc_o = acc_o + jnp.dot(so, wk, preferred_element_type=f32)
    y2 = _bn_relu_pool(acc_e, acc_o, s2_ref, t2_ref)               # (tb*l4, 64)
    a2_ref[:, 0:1, :] = jnp.zeros((tb, 1, 64), f32)
    a2_ref[:, l4 + 1:l4 + 2, :] = jnp.zeros((tb, 1, 64), f32)
    a2_ref[:, 1:l4 + 1, :] = y2.reshape(tb, l4, 64)

    # ---- stage 3: conv3(K=3) + bn3 + relu + pool(2,2) ----------------------
    acc_e = jnp.zeros((tb * l8, 128), f32)
    acc_o = jnp.zeros((tb * l8, 128), f32)
    for k in range(3):
        wk = wc3_ref[k]                                            # (64, 128)
        se = a2_ref[:, pl.ds(k, l8, stride=2), :].reshape(tb * l8, 64).astype(bf16)
        so = a2_ref[:, pl.ds(k + 1, l8, stride=2), :].reshape(tb * l8, 64).astype(bf16)
        acc_e = acc_e + jnp.dot(se, wk, preferred_element_type=f32)
        acc_o = acc_o + jnp.dot(so, wk, preferred_element_type=f32)
    p3 = _bn_relu_pool(acc_e, acc_o, s3_ref, t3_ref).reshape(tb, l8, 128)

    # ---- MLP head: fc1 + bn4 + relu + fc2 + bn5 + relu + fc3 ---------------
    # fc1 accumulated per conv position (flatten absorbed into wf1 layout);
    # dropout1/dropout2 are identity in inference.
    h2 = wf2_ref.shape[0]
    h = jnp.zeros((tb, h2), f32)
    for l in range(l8):                                            # small static unroll
        h = h + jnp.dot(p3[:, l, :].astype(bf16), wf1_ref[l],
                        preferred_element_type=f32)
    h = jnp.maximum(h * s4_ref[...] + t4_ref[...], 0.0)
    h = jnp.dot(h.astype(bf16), wf2_ref[...], preferred_element_type=f32)
    h = jnp.maximum(h * s5_ref[...] + t5_ref[...], 0.0)
    o_ref[...] = (jnp.dot(h.astype(bf16), wf3_ref[...],
                          preferred_element_type=f32) + b3_ref[...])


# -------------------------------- wrapper -----------------------------------

def _pick_tb(batch, input_size):
    """Largest batch tile that fits the VMEM budget (>=2 grid steps if possible)."""
    bp8 = _round_up(batch, 8)
    per_sample = (
        input_size * 8 * 4 * 2                 # stage-1 patch block, double-buffered
        + (input_size // 2 + 2) * 32 * 4       # a1 scratch (f32)
        + (input_size // 4 + 2) * 64 * 4       # a2 scratch (f32)
        + input_size * 48 * 4)                 # transient value headroom
    tb = 8
    # Keep >=2 grid steps when the batch allows it (v7x: two TensorCores share
    # the "parallel" batch axis); grow the tile while it fits the VMEM budget.
    while (tb * 2 <= max(8, bp8 // 2) and tb * 2 <= 256
           and tb * 2 * per_sample <= _VMEM_BUDGET):
        tb *= 2
    return tb


def forward(prep, x, num_classes):
    """x: (B, input_size) float32 -> logits (B, num_classes)."""
    b, length = x.shape
    assert length % 8 == 0, "input_size must be divisible by 8"
    l8 = length // 8
    ncp = prep["wf3"].shape[1]
    h2 = prep["wf2"].shape[0]
    h1 = prep["wf2"].shape[1]

    tb = _pick_tb(b, length)
    bp = _round_up(b, tb)

    # Stage-1 tap patch (Bp, L, 8): patch[b, l, k] = zero-padded x[b, l + k - 2]
    # for k < 5, zeros for k in 5..7.  Only XLA-side data movement (~8x the raw
    # input bytes); everything downstream stays in the fused kernel / VMEM.
    xpad = jnp.pad(x.astype(jnp.float32), ((0, bp - b), (2, 2)))
    patch = jnp.stack([xpad[:, k:k + length] for k in range(5)], axis=-1)
    patch = jnp.pad(patch, ((0, 0), (0, 0), (0, 3)))               # (bp, L, 8)

    kernel = functools.partial(_fused_kernel, tb, length)
    out = pl.pallas_call(
        kernel,
        out_shape=jax.ShapeDtypeStruct((bp, ncp), jnp.float32),
        grid=(bp // tb,),
        in_specs=[
            pl.BlockSpec((tb, length, 8), lambda i: (i, 0, 0)),    # stage-1 patch
            pl.BlockSpec((8, 32), lambda i: (0, 0)),               # wc1
            pl.BlockSpec((1, 32), lambda i: (0, 0)),               # s1
            pl.BlockSpec((1, 32), lambda i: (0, 0)),               # t1
            pl.BlockSpec((3, 32, 64), lambda i: (0, 0, 0)),        # wc2
            pl.BlockSpec((1, 64), lambda i: (0, 0)),               # s2
            pl.BlockSpec((1, 64), lambda i: (0, 0)),               # t2
            pl.BlockSpec((3, 64, 128), lambda i: (0, 0, 0)),       # wc3
            pl.BlockSpec((1, 128), lambda i: (0, 0)),              # s3
            pl.BlockSpec((1, 128), lambda i: (0, 0)),              # t3
            pl.BlockSpec((l8, 128, h2), lambda i: (0, 0, 0)),      # wf1
            pl.BlockSpec((1, h2), lambda i: (0, 0)),               # s4
            pl.BlockSpec((1, h2), lambda i: (0, 0)),               # t4
            pl.BlockSpec((h2, h1), lambda i: (0, 0)),              # wf2
            pl.BlockSpec((1, h1), lambda i: (0, 0)),               # s5
            pl.BlockSpec((1, h1), lambda i: (0, 0)),               # t5
            pl.BlockSpec((h1, ncp), lambda i: (0, 0)),             # wf3
            pl.BlockSpec((1, ncp), lambda i: (0, 0)),              # b3
        ],
        out_specs=pl.BlockSpec((tb, ncp), lambda i: (i, 0)),
        scratch_shapes=[
            pltpu.VMEM((tb, length // 2 + 2, 32), jnp.float32),
            pltpu.VMEM((tb, length // 4 + 2, 64), jnp.float32),
        ],
        compiler_params=pltpu.CompilerParams(
            dimension_semantics=("parallel",),
            vmem_limit_bytes=_VMEM_LIMIT),
    )(patch, prep["wc1"], prep["s1"], prep["t1"],
      prep["wc2"], prep["s2"], prep["t2"],
      prep["wc3"], prep["s3"], prep["t3"],
      prep["wf1"], prep["s4"], prep["t4"],
      prep["wf2"], prep["s5"], prep["t5"],
      prep["wf3"], prep["b3"])
    return out[:b, :num_classes]


# ---------------------------- parameter setup -------------------------------

def bn_fold(bias, gamma, beta, mean, var):
    scale = gamma / jnp.sqrt(var + EPS)
    shift = (bias - mean) * scale + beta
    return scale, shift


def prepare_params(p, input_size, hidden_size, num_classes):
    """One-time prep: BN folding, transposes, fc1 flatten permutation, casts."""
    l8 = input_size // 8
    h2 = hidden_size * 2
    ncp = _round_up(max(num_classes, 1), 128)
    prep = {}

    # conv1: torch (32, 1, 5) -> taps-in-rows (8, 32), rows 5..7 zero.
    wc1 = jnp.transpose(p["conv1_w"], (2, 1, 0)).reshape(5, 32)
    prep["wc1"] = jnp.pad(wc1, ((0, 3), (0, 0))).astype(jnp.bfloat16)
    # conv2/3: torch (Cout, Cin, K) -> (K, Cin, Cout).
    prep["wc2"] = jnp.transpose(p["conv2_w"], (2, 1, 0)).astype(jnp.bfloat16)
    prep["wc3"] = jnp.transpose(p["conv3_w"], (2, 1, 0)).astype(jnp.bfloat16)
    for i, (bias, bn) in enumerate(
            [(p["conv1_b"], p["bn1"]), (p["conv2_b"], p["bn2"]),
             (p["conv3_b"], p["bn3"])], start=1):
        s, t = bn_fold(bias, *bn)
        prep[f"s{i}"] = s.reshape(1, -1).astype(jnp.float32)
        prep[f"t{i}"] = t.reshape(1, -1).astype(jnp.float32)

    # fc1: torch (2H, fc_in) with channel-major flatten (idx = c*l8 + l) ->
    # per-position blocks wf1[l, c, j] matching the kernel's channel-last
    # accumulation over conv positions.
    wf1 = p["fc1_w"].reshape(h2, 128, l8)
    prep["wf1"] = jnp.transpose(wf1, (2, 1, 0)).astype(jnp.bfloat16)
    s4, t4 = bn_fold(p["fc1_b"], *p["bn4"])
    prep["s4"] = s4.reshape(1, -1).astype(jnp.float32)
    prep["t4"] = t4.reshape(1, -1).astype(jnp.float32)

    prep["wf2"] = jnp.transpose(p["fc2_w"]).astype(jnp.bfloat16)   # (2H, H)
    s5, t5 = bn_fold(p["fc2_b"], *p["bn5"])
    prep["s5"] = s5.reshape(1, -1).astype(jnp.float32)
    prep["t5"] = t5.reshape(1, -1).astype(jnp.float32)

    wf3 = jnp.transpose(p["fc3_w"]).astype(jnp.bfloat16)           # (H, NC)
    prep["wf3"] = jnp.pad(wf3, ((0, 0), (0, ncp - num_classes)))   # lane-dense
    prep["b3"] = jnp.pad(p["fc3_b"], (0, ncp - num_classes)
                         ).reshape(1, ncp).astype(jnp.float32)
    return prep


def init_params(key, input_size, hidden_size, num_classes):
    """Random parameters in PyTorch layout with eval-mode BN running stats."""
    fc_in = (input_size // 8) * 128
    ks = jax.random.split(key, 20)

    def w_init(k, shape, fan_in):
        return jax.random.normal(k, shape, jnp.float32) / jnp.sqrt(
            jnp.float32(fan_in))

    def bn_init(k, c):
        kg, kb, km, kv = jax.random.split(k, 4)
        gamma = 1.0 + 0.1 * jax.random.normal(kg, (c,), jnp.float32)
        beta = 0.1 * jax.random.normal(kb, (c,), jnp.float32)
        mean = 0.1 * jax.random.normal(km, (c,), jnp.float32)
        var = jax.random.uniform(kv, (c,), jnp.float32, minval=0.5, maxval=1.5)
        return (gamma, beta, mean, var)

    p = {}
    p["conv1_w"] = w_init(ks[0], (32, 1, 5), 5)
    p["conv1_b"] = 0.1 * jax.random.normal(ks[1], (32,), jnp.float32)
    p["conv2_w"] = w_init(ks[2], (64, 32, 3), 96)
    p["conv2_b"] = 0.1 * jax.random.normal(ks[3], (64,), jnp.float32)
    p["conv3_w"] = w_init(ks[4], (128, 64, 3), 192)
    p["conv3_b"] = 0.1 * jax.random.normal(ks[5], (128,), jnp.float32)
    p["bn1"] = bn_init(ks[6], 32)
    p["bn2"] = bn_init(ks[7], 64)
    p["bn3"] = bn_init(ks[8], 128)
    p["fc1_w"] = w_init(ks[9], (hidden_size * 2, fc_in), fc_in)
    p["fc1_b"] = 0.1 * jax.random.normal(ks[10], (hidden_size * 2,), jnp.float32)
    p["fc2_w"] = w_init(ks[11], (hidden_size, hidden_size * 2), hidden_size * 2)
    p["fc2_b"] = 0.1 * jax.random.normal(ks[12], (hidden_size,), jnp.float32)
    p["fc3_w"] = w_init(ks[13], (num_classes, hidden_size), hidden_size)
    p["fc3_b"] = 0.1 * jax.random.normal(ks[14], (num_classes,), jnp.float32)
    p["bn4"] = bn_init(ks[15], hidden_size * 2)
    p["bn5"] = bn_init(ks[16], hidden_size)
    return p


# --------------------------- pure-JAX reference ------------------------------

def reference_forward(p, x):
    """f32 XLA reference mirroring the PyTorch module (eval mode)."""
    f32 = jnp.float32
    h = x.astype(f32)[:, None, :]                               # (B, 1, L) NCL

    def conv_bn_relu_pool(h, w, b, bn):
        gamma, beta, mean, var = bn
        pad = w.shape[2] // 2
        y = jax.lax.conv_general_dilated(
            h, w.astype(f32), window_strides=(1,), padding=[(pad, pad)],
            dimension_numbers=("NCH", "OIH", "NCH"))
        y = y + b[None, :, None]
        y = (gamma[None, :, None] * (y - mean[None, :, None])
             / jnp.sqrt(var[None, :, None] + EPS) + beta[None, :, None])
        y = jnp.maximum(y, 0.0)
        bsz, c, length = y.shape
        return y.reshape(bsz, c, length // 2, 2).max(axis=3)

    h = conv_bn_relu_pool(h, p["conv1_w"], p["conv1_b"], p["bn1"])
    h = conv_bn_relu_pool(h, p["conv2_w"], p["conv2_b"], p["bn2"])
    h = conv_bn_relu_pool(h, p["conv3_w"], p["conv3_b"], p["bn3"])
    flat = h.reshape(h.shape[0], -1)                            # channel-major

    def bn1d(z, bn):
        gamma, beta, mean, var = bn
        return gamma * (z - mean) / jnp.sqrt(var + EPS) + beta

    z = flat @ p["fc1_w"].T + p["fc1_b"]
    z = jnp.maximum(bn1d(z, p["bn4"]), 0.0)
    z = z @ p["fc2_w"].T + p["fc2_b"]
    z = jnp.maximum(bn1d(z, p["bn5"]), 0.0)
    return z @ p["fc3_w"].T + p["fc3_b"]


if __name__ == "__main__":
    B, INPUT_SIZE, HIDDEN, NUM_CLASSES = 2, 16, 32, 10
    key = jax.random.PRNGKey(0)
    kx, kp = jax.random.split(key)
    params = init_params(kp, INPUT_SIZE, HIDDEN, NUM_CLASSES)
    prep = prepare_params(params, INPUT_SIZE, HIDDEN, NUM_CLASSES)
    x = jax.random.normal(kx, (B, INPUT_SIZE), dtype=jnp.float32)

    fwd = jax.jit(functools.partial(forward, num_classes=NUM_CLASSES))
    out = jax.block_until_ready(fwd(prep, x))
    assert out.shape == (B, NUM_CLASSES)
    assert bool(jnp.all(jnp.isfinite(out)))

    # Loose check vs. f32 XLA reference (kernel uses bf16 matmul operands).
    ref = jax.block_until_ready(reference_forward(params, x))
    err = float(jnp.max(jnp.abs(out - ref)))
    scale = max(1.0, float(jnp.max(jnp.abs(ref))))
    assert err <= 7.5e-2 * scale, f"mismatch: max|diff|={err}, ref scale={scale}"
    print("KERNEL_OK")
</pallas_src>

<mosaic_0001>
module attributes {stable_mosaic.version = 11 : i64} {
  func.func @_fused_kernel(%arg0: i32, %arg1: memref<8x16x8xf32, #tpu.memory_space<vmem>>, %arg2: memref<8x32xbf16, #tpu.memory_space<vmem>>, %arg3: memref<1x32xf32, #tpu.memory_space<vmem>>, %arg4: memref<1x32xf32, #tpu.memory_space<vmem>>, %arg5: memref<3x32x64xbf16, #tpu.memory_space<vmem>>, %arg6: memref<1x64xf32, #tpu.memory_space<vmem>>, %arg7: memref<1x64xf32, #tpu.memory_space<vmem>>, %arg8: memref<3x64x128xbf16, #tpu.memory_space<vmem>>, %arg9: memref<1x128xf32, #tpu.memory_space<vmem>>, %arg10: memref<1x128xf32, #tpu.memory_space<vmem>>, %arg11: memref<2x128x64xbf16, #tpu.memory_space<vmem>>, %arg12: memref<1x64xf32, #tpu.memory_space<vmem>>, %arg13: memref<1x64xf32, #tpu.memory_space<vmem>>, %arg14: memref<64x32xbf16, #tpu.memory_space<vmem>>, %arg15: memref<1x32xf32, #tpu.memory_space<vmem>>, %arg16: memref<1x32xf32, #tpu.memory_space<vmem>>, %arg17: memref<32x128xbf16, #tpu.memory_space<vmem>>, %arg18: memref<1x128xf32, #tpu.memory_space<vmem>>, %arg19: memref<8x128xf32, #tpu.memory_space<vmem>>, %arg20: memref<8x10x32xf32, #tpu.memory_space<vmem>>, %arg21: memref<8x6x64xf32, #tpu.memory_space<vmem>>) attributes {dimension_semantics = [#tpu.dimension_semantics<parallel>], iteration_bounds = array<i64: 1>, scalar_prefetch = 0 : i64, scratch_operands = 2 : i64, tpu.core_type = #tpu.core_type<tc>, window_params = [{transform_indices = @transform_0, window_bounds = array<i64: 8, 16, 8>}, {pipeline_mode = #tpu.pipeline_mode<synchronous>, transform_indices = @transform_1, window_bounds = array<i64: 8, 32>}, {pipeline_mode = #tpu.pipeline_mode<synchronous>, transform_indices = @transform_2, window_bounds = array<i64: 1, 32>}, {pipeline_mode = #tpu.pipeline_mode<synchronous>, transform_indices = @transform_3, window_bounds = array<i64: 1, 32>}, {pipeline_mode = #tpu.pipeline_mode<synchronous>, transform_indices = @transform_4, window_bounds = array<i64: 3, 32, 64>}, {pipeline_mode = #tpu.pipeline_mode<synchronous>, transform_indices = @transform_5, window_bounds = array<i64: 1, 64>}, {pipeline_mode = #tpu.pipeline_mode<synchronous>, transform_indices = @transform_6, window_bounds = array<i64: 1, 64>}, {pipeline_mode = #tpu.pipeline_mode<synchronous>, transform_indices = @transform_7, window_bounds = array<i64: 3, 64, 128>}, {pipeline_mode = #tpu.pipeline_mode<synchronous>, transform_indices = @transform_8, window_bounds = array<i64: 1, 128>}, {pipeline_mode = #tpu.pipeline_mode<synchronous>, transform_indices = @transform_9, window_bounds = array<i64: 1, 128>}, {pipeline_mode = #tpu.pipeline_mode<synchronous>, transform_indices = @transform_10, window_bounds = array<i64: 2, 128, 64>}, {pipeline_mode = #tpu.pipeline_mode<synchronous>, transform_indices = @transform_11, window_bounds = array<i64: 1, 64>}, {pipeline_mode = #tpu.pipeline_mode<synchronous>, transform_indices = @transform_12, window_bounds = array<i64: 1, 64>}, {pipeline_mode = #tpu.pipeline_mode<synchronous>, transform_indices = @transform_13, window_bounds = array<i64: 64, 32>}, {pipeline_mode = #tpu.pipeline_mode<synchronous>, transform_indices = @transform_14, window_bounds = array<i64: 1, 32>}, {pipeline_mode = #tpu.pipeline_mode<synchronous>, transform_indices = @transform_15, window_bounds = array<i64: 1, 32>}, {pipeline_mode = #tpu.pipeline_mode<synchronous>, transform_indices = @transform_16, window_bounds = array<i64: 32, 128>}, {pipeline_mode = #tpu.pipeline_mode<synchronous>, transform_indices = @transform_17, window_bounds = array<i64: 1, 128>}, {transform_indices = @transform_18, window_bounds = array<i64: 8, 128>}]} {
    %c0 = arith.constant 0 : index
    %c0_0 = arith.constant 0 : index
    %0 = vector.load %arg2[%c0, %c0_0] : memref<8x32xbf16, #tpu.memory_space<vmem>>, vector<8x32xbf16>
    %c0_1 = arith.constant 0 : index
    %c0_2 = arith.constant 0 : index
    %c0_3 = arith.constant 0 : index
    %1 = tpu.strided_load %arg1[%c0_1, %c0_2, %c0_3] {strides = array<i32: 1, 2, 1>} : memref<8x16x8xf32, #tpu.memory_space<vmem>>, vector<8x8x8xf32>
    %2 = vector.shape_cast %1 : vector<8x8x8xf32> to vector<64x8xf32>
    %3 = arith.truncf %2 : vector<64x8xf32> to vector<64x8xbf16>
    %c0_4 = arith.constant 0 : index
    %c1 = arith.constant 1 : index
    %c0_5 = arith.constant 0 : index
    %4 = tpu.strided_load %arg1[%c0_4, %c1, %c0_5] {strides = array<i32: 1, 2, 1>} : memref<8x16x8xf32, #tpu.memory_space<vmem>>, vector<8x8x8xf32>
    %5 = vector.shape_cast %4 : vector<8x8x8xf32> to vector<64x8xf32>
    %6 = arith.truncf %5 : vector<64x8xf32> to vector<64x8xbf16>
    %cst = arith.constant dense<0.000000e+00> : vector<64x32xf32>
    %7 = tpu.matmul %3, %0, %cst {dimension_numbers = #tpu.dot_dimension_numbers<[1], [0], [0], [1], [0, 0, 1, 1], [], []>} : vector<64x8xbf16>, vector<8x32xbf16>, vector<64x32xf32> -> vector<64x32xf32>
    %cst_6 = arith.constant dense<0.000000e+00> : vector<64x32xf32>
    %8 = tpu.matmul %6, %0, %cst_6 {dimension_numbers = #tpu.dot_dimension_numbers<[1], [0], [0], [1], [0, 0, 1, 1], [], []>} : vector<64x8xbf16>, vector<8x32xbf16>, vector<64x32xf32> -> vector<64x32xf32>
    %c0_7 = arith.constant 0 : index
    %c0_8 = arith.constant 0 : index
    %9 = vector.load %arg3[%c0_7, %c0_8] : memref<1x32xf32, #tpu.memory_space<vmem>>, vector<1x32xf32>
    %c0_9 = arith.constant 0 : index
    %c0_10 = arith.constant 0 : index
    %10 = vector.load %arg4[%c0_9, %c0_10] : memref<1x32xf32, #tpu.memory_space<vmem>>, vector<1x32xf32>
    %11 = vector.broadcast %9 : vector<1x32xf32> to vector<64x32xf32>
    %12 = arith.mulf %7, %11 : vector<64x32xf32>
    %13 = vector.broadcast %10 : vector<1x32xf32> to vector<64x32xf32>
    %14 = arith.addf %12, %13 : vector<64x32xf32>
    %cst_11 = arith.constant 0.000000e+00 : f32
    %15 = vector.broadcast %cst_11 : f32 to vector<64x32xf32>
    %16 = arith.maximumf %14, %15 : vector<64x32xf32>
    %17 = vector.broadcast %9 : vector<1x32xf32> to vector<64x32xf32>
    %18 = arith.mulf %8, %17 : vector<64x32xf32>
    %19 = vector.broadcast %10 : vector<1x32xf32> to vector<64x32xf32>
    %20 = arith.addf %18, %19 : vector<64x32xf32>
    %cst_12 = arith.constant 0.000000e+00 : f32
    %21 = vector.broadcast %cst_12 : f32 to vector<64x32xf32>
    %22 = arith.maximumf %20, %21 : vector<64x32xf32>
    %23 = arith.maximumf %16, %22 : vector<64x32xf32>
    %cst_13 = arith.constant 0.000000e+00 : f32
    %24 = vector.broadcast %cst_13 : f32 to vector<8x1x32xf32>
    %c0_14 = arith.constant 0 : index
    %c0_15 = arith.constant 0 : index
    %c0_16 = arith.constant 0 : index
    %25 = vector.load %arg20[%c0_14, %c0_15, %c0_16] : memref<8x10x32xf32, #tpu.memory_space<vmem>>, vector<8x1x32xf32>
    tpu.vector_store %arg20[%c0_14, %c0_15, %c0_16], %24 {strides = array<i32>} : memref<8x10x32xf32, #tpu.memory_space<vmem>>, vector<8x1x32xf32>,
    %cst_17 = arith.constant 0.000000e+00 : f32
    %26 = vector.broadcast %cst_17 : f32 to vector<8x1x32xf32>
    %c0_18 = arith.constant 0 : index
    %c9 = arith.constant 9 : index
    %c0_19 = arith.constant 0 : index
    %27 = vector.load %arg20[%c0_18, %c9, %c0_19] : memref<8x10x32xf32, #tpu.memory_space<vmem>>, vector<8x1x32xf32>
    tpu.vector_store %arg20[%c0_18, %c9, %c0_19], %26 {strides = array<i32>} : memref<8x10x32xf32, #tpu.memory_space<vmem>>, vector<8x1x32xf32>,
    %28 = vector.shape_cast %23 : vector<64x32xf32> to vector<8x8x32xf32>
    %c0_20 = arith.constant 0 : index
    %c1_21 = arith.constant 1 : index
    %c0_22 = arith.constant 0 : index
    %29 = vector.load %arg20[%c0_20, %c1_21, %c0_22] : memref<8x10x32xf32, #tpu.memory_space<vmem>>, vector<8x8x32xf32>
    tpu.vector_store %arg20[%c0_20, %c1_21, %c0_22], %28 {strides = array<i32>} : memref<8x10x32xf32, #tpu.memory_space<vmem>>, vector<8x8x32xf32>,
    %cst_23 = arith.constant 0.000000e+00 : f32
    %30 = vector.broadcast %cst_23 : f32 to vector<32x64xf32>
    %cst_24 = arith.constant 0.000000e+00 : f32
    %31 = vector.broadcast %cst_24 : f32 to vector<32x64xf32>
    %c0_25 = arith.constant 0 : index
    %c0_26 = arith.constant 0 : index
    %c0_27 = arith.constant 0 : index
    %32 = vector.load %arg5[%c0_25, %c0_26, %c0_27] : memref<3x32x64xbf16, #tpu.memory_space<vmem>>, vector<1x32x64xbf16>
    %33 = vector.shape_cast %32 : vector<1x32x64xbf16> to vector<32x64xbf16>
    %c0_28 = arith.constant 0 : index
    %c0_29 = arith.constant 0 : index
    %c0_30 = arith.constant 0 : index
    %34 = tpu.strided_load %arg20[%c0_28, %c0_29, %c0_30] {strides = array<i32: 1, 2, 1>} : memref<8x10x32xf32, #tpu.memory_space<vmem>>, vector<8x4x32xf32>
    %35 = vector.shape_cast %34 : vector<8x4x32xf32> to vector<32x32xf32>
    %36 = arith.truncf %35 : vector<32x32xf32> to vector<32x32xbf16>
    %c0_31 = arith.constant 0 : index
    %c1_32 = arith.constant 1 : index
    %c0_33 = arith.constant 0 : index
    %37 = tpu.strided_load %arg20[%c0_31, %c1_32, %c0_33] {strides = array<i32: 1, 2, 1>} : memref<8x10x32xf32, #tpu.memory_space<vmem>>, vector<8x4x32xf32>
    %38 = vector.shape_cast %37 : vector<8x4x32xf32> to vector<32x32xf32>
    %39 = arith.truncf %38 : vector<32x32xf32> to vector<32x32xbf16>
    %cst_34 = arith.constant dense<0.000000e+00> : vector<32x64xf32>
    %40 = tpu.matmul %36, %33, %cst_34 {dimension_numbers = #tpu.dot_dimension_numbers<[1], [0], [0], [1], [0, 0, 1, 1], [], []>} : vector<32x32xbf16>, vector<32x64xbf16>, vector<32x64xf32> -> vector<32x64xf32>
    %41 = arith.addf %30, %40 : vector<32x64xf32>
    %cst_35 = arith.constant dense<0.000000e+00> : vector<32x64xf32>
    %42 = tpu.matmul %39, %33, %cst_35 {dimension_numbers = #tpu.dot_dimension_numbers<[1], [0], [0], [1], [0, 0, 1, 1], [], []>} : vector<32x32xbf16>, vector<32x64xbf16>, vector<32x64xf32> -> vector<32x64xf32>
    %43 = arith.addf %31, %42 : vector<32x64xf32>
    %c1_36 = arith.constant 1 : index
    %c0_37 = arith.constant 0 : index
    %c0_38 = arith.constant 0 : index
    %44 = vector.load %arg5[%c1_36, %c0_37, %c0_38] : memref<3x32x64xbf16, #tpu.memory_space<vmem>>, vector<1x32x64xbf16>
    %45 = vector.shape_cast %44 : vector<1x32x64xbf16> to vector<32x64xbf16>
    %c0_39 = arith.constant 0 : index
    %c1_40 = arith.constant 1 : index
    %c0_41 = arith.constant 0 : index
    %46 = tpu.strided_load %arg20[%c0_39, %c1_40, %c0_41] {strides = array<i32: 1, 2, 1>} : memref<8x10x32xf32, #tpu.memory_space<vmem>>, vector<8x4x32xf32>
    %47 = vector.shape_cast %46 : vector<8x4x32xf32> to vector<32x32xf32>
    %48 = arith.truncf %47 : vector<32x32xf32> to vector<32x32xbf16>
    %c0_42 = arith.constant 0 : index
    %c2 = arith.constant 2 : index
    %c0_43 = arith.constant 0 : index
    %49 = tpu.strided_load %arg20[%c0_42, %c2, %c0_43] {strides = array<i32: 1, 2, 1>} : memref<8x10x32xf32, #tpu.memory_space<vmem>>, vector<8x4x32xf32>
    %50 = vector.shape_cast %49 : vector<8x4x32xf32> to vector<32x32xf32>
    %51 = arith.truncf %50 : vector<32x32xf32> to vector<32x32xbf16>
    %cst_44 = arith.constant dense<0.000000e+00> : vector<32x64xf32>
    %52 = tpu.matmul %48, %45, %cst_44 {dimension_numbers = #tpu.dot_dimension_numbers<[1], [0], [0], [1], [0, 0, 1, 1], [], []>} : vector<32x32xbf16>, vector<32x64xbf16>, vector<32x64xf32> -> vector<32x64xf32>
    %53 = arith.addf %41, %52 : vector<32x64xf32>
    %cst_45 = arith.constant dense<0.000000e+00> : vector<32x64xf32>
    %54 = tpu.matmul %51, %45, %cst_45 {dimension_numbers = #tpu.dot_dimension_numbers<[1], [0], [0], [1], [0, 0, 1, 1], [], []>} : vector<32x32xbf16>, vector<32x64xbf16>, vector<32x64xf32> -> vector<32x64xf32>
    %55 = arith.addf %43, %54 : vector<32x64xf32>
    %c2_46 = arith.constant 2 : index
    %c0_47 = arith.constant 0 : index
    %c0_48 = arith.constant 0 : index
    %56 = vector.load %arg5[%c2_46, %c0_47, %c0_48] : memref<3x32x64xbf16, #tpu.memory_space<vmem>>, vector<1x32x64xbf16>
    %57 = vector.shape_cast %56 : vector<1x32x64xbf16> to vector<32x64xbf16>
    %c0_49 = arith.constant 0 : index
    %c2_50 = arith.constant 2 : index
    %c0_51 = arith.constant 0 : index
    %58 = tpu.strided_load %arg20[%c0_49, %c2_50, %c0_51] {strides = array<i32: 1, 2, 1>} : memref<8x10x32xf32, #tpu.memory_space<vmem>>, vector<8x4x32xf32>
    %59 = vector.shape_cast %58 : vector<8x4x32xf32> to vector<32x32xf32>
    %60 = arith.truncf %59 : vector<32x32xf32> to vector<32x32xbf16>
    %c0_52 = arith.constant 0 : index
    %c3 = arith.constant 3 : index
    %c0_53 = arith.constant 0 : index
    %61 = tpu.strided_load %arg20[%c0_52, %c3, %c0_53] {strides = array<i32: 1, 2, 1>} : memref<8x10x32xf32, #tpu.memory_space<vmem>>, vector<8x4x32xf32>
    %62 = vector.shape_cast %61 : vector<8x4x32xf32> to vector<32x32xf32>
    %63 = arith.truncf %62 : vector<32x32xf32> to vector<32x32xbf16>
    %cst_54 = arith.constant dense<0.000000e+00> : vector<32x64xf32>
    %64 = tpu.matmul %60, %57, %cst_54 {dimension_numbers = #tpu.dot_dimension_numbers<[1], [0], [0], [1], [0, 0, 1, 1], [], []>} : vector<32x32xbf16>, vector<32x64xbf16>, vector<32x64xf32> -> vector<32x64xf32>
    %65 = arith.addf %53, %64 : vector<32x64xf32>
    %cst_55 = arith.constant dense<0.000000e+00> : vector<32x64xf32>
    %66 = tpu.matmul %63, %57, %cst_55 {dimension_numbers = #tpu.dot_dimension_numbers<[1], [0], [0], [1], [0, 0, 1, 1], [], []>} : vector<32x32xbf16>, vector<32x64xbf16>, vector<32x64xf32> -> vector<32x64xf32>
    %67 = arith.addf %55, %66 : vector<32x64xf32>
    %c0_56 = arith.constant 0 : index
    %c0_57 = arith.constant 0 : index
    %68 = vector.load %arg6[%c0_56, %c0_57] : memref<1x64xf32, #tpu.memory_space<vmem>>, vector<1x64xf32>
    %c0_58 = arith.constant 0 : index
    %c0_59 = arith.constant 0 : index
    %69 = vector.load %arg7[%c0_58, %c0_59] : memref<1x64xf32, #tpu.memory_space<vmem>>, vector<1x64xf32>
    %70 = vector.broadcast %68 : vector<1x64xf32> to vector<32x64xf32>
    %71 = arith.mulf %65, %70 : vector<32x64xf32>
    %72 = vector.broadcast %69 : vector<1x64xf32> to vector<32x64xf32>
    %73 = arith.addf %71, %72 : vector<32x64xf32>
    %cst_60 = arith.constant 0.000000e+00 : f32
    %74 = vector.broadcast %cst_60 : f32 to vector<32x64xf32>
    %75 = arith.maximumf %73, %74 : vector<32x64xf32>
    %76 = vector.broadcast %68 : vector<1x64xf32> to vector<32x64xf32>
    %77 = arith.mulf %67, %76 : vector<32x64xf32>
    %78 = vector.broadcast %69 : vector<1x64xf32> to vector<32x64xf32>
    %79 = arith.addf %77, %78 : vector<32x64xf32>
    %cst_61 = arith.constant 0.000000e+00 : f32
    %80 = vector.broadcast %cst_61 : f32 to vector<32x64xf32>
    %81 = arith.maximumf %79, %80 : vector<32x64xf32>
    %82 = arith.maximumf %75, %81 : vector<32x64xf32>
    %cst_62 = arith.constant 0.000000e+00 : f32
    %83 = vector.broadcast %cst_62 : f32 to vector<8x1x64xf32>
    %c0_63 = arith.constant 0 : index
    %c0_64 = arith.constant 0 : index
    %c0_65 = arith.constant 0 : index
    %84 = vector.load %arg21[%c0_63, %c0_64, %c0_65] : memref<8x6x64xf32, #tpu.memory_space<vmem>>, vector<8x1x64xf32>
    tpu.vector_store %arg21[%c0_63, %c0_64, %c0_65], %83 {strides = array<i32>} : memref<8x6x64xf32, #tpu.memory_space<vmem>>, vector<8x1x64xf32>,
    %cst_66 = arith.constant 0.000000e+00 : f32
    %85 = vector.broadcast %cst_66 : f32 to vector<8x1x64xf32>
    %c0_67 = arith.constant 0 : index
    %c5 = arith.constant 5 : index
    %c0_68 = arith.constant 0 : index
    %86 = vector.load %arg21[%c0_67, %c5, %c0_68] : memref<8x6x64xf32, #tpu.memory_space<vmem>>, vector<8x1x64xf32>
    tpu.vector_store %arg21[%c0_67, %c5, %c0_68], %85 {strides = array<i32>} : memref<8x6x64xf32, #tpu.memory_space<vmem>>, vector<8x1x64xf32>,
    %87 = vector.shape_cast %82 : vector<32x64xf32> to vector<8x4x64xf32>
    %c0_69 = arith.constant 0 : index
    %c1_70 = arith.constant 1 : index
    %c0_71 = arith.constant 0 : index
    %88 = vector.load %arg21[%c0_69, %c1_70, %c0_71] : memref<8x6x64xf32, #tpu.memory_space<vmem>>, vector<8x4x64xf32>
    tpu.vector_store %arg21[%c0_69, %c1_70, %c0_71], %87 {strides = array<i32>} : memref<8x6x64xf32, #tpu.memory_space<vmem>>, vector<8x4x64xf32>,
    %cst_72 = arith.constant 0.000000e+00 : f32
    %89 = vector.broadcast %cst_72 : f32 to vector<16x128xf32>
    %cst_73 = arith.constant 0.000000e+00 : f32
    %90 = vector.broadcast %cst_73 : f32 to vector<16x128xf32>
    %c0_74 = arith.constant 0 : index
    %c0_75 = arith.constant 0 : index
    %c0_76 = arith.constant 0 : index
    %91 = vector.load %arg8[%c0_74, %c0_75, %c0_76] : memref<3x64x128xbf16, #tpu.memory_space<vmem>>, vector<1x64x128xbf16>
    %92 = vector.shape_cast %91 : vector<1x64x128xbf16> to vector<64x128xbf16>
    %c0_77 = arith.constant 0 : index
    %c0_78 = arith.constant 0 : index
    %c0_79 = arith.constant 0 : index
    %93 = tpu.strided_load %arg21[%c0_77, %c0_78, %c0_79] {strides = array<i32: 1, 2, 1>} : memref<8x6x64xf32, #tpu.memory_space<vmem>>, vector<8x2x64xf32>
    %94 = vector.shape_cast %93 : vector<8x2x64xf32> to vector<16x64xf32>
    %95 = arith.truncf %94 : vector<16x64xf32> to vector<16x64xbf16>
    %c0_80 = arith.constant 0 : index
    %c1_81 = arith.constant 1 : index
    %c0_82 = arith.constant 0 : index
    %96 = tpu.strided_load %arg21[%c0_80, %c1_81, %c0_82] {strides = array<i32: 1, 2, 1>} : memref<8x6x64xf32, #tpu.memory_space<vmem>>, vector<8x2x64xf32>
    %97 = vector.shape_cast %96 : vector<8x2x64xf32> to vector<16x64xf32>
    %98 = arith.truncf %97 : vector<16x64xf32> to vector<16x64xbf16>
    %cst_83 = arith.constant dense<0.000000e+00> : vector<16x128xf32>
    %99 = tpu.matmul %95, %92, %cst_83 {dimension_numbers = #tpu.dot_dimension_numbers<[1], [0], [0], [1], [0, 0, 1, 1], [], []>} : vector<16x64xbf16>, vector<64x128xbf16>, vector<16x128xf32> -> vector<16x128xf32>
    %100 = arith.addf %89, %99 : vector<16x128xf32>
    %cst_84 = arith.constant dense<0.000000e+00> : vector<16x128xf32>
    %101 = tpu.matmul %98, %92, %cst_84 {dimension_numbers = #tpu.dot_dimension_numbers<[1], [0], [0], [1], [0, 0, 1, 1], [], []>} : vector<16x64xbf16>, vector<64x128xbf16>, vector<16x128xf32> -> vector<16x128xf32>
    %102 = arith.addf %90, %101 : vector<16x128xf32>
    %c1_85 = arith.constant 1 : index
    %c0_86 = arith.constant 0 : index
    %c0_87 = arith.constant 0 : index
    %103 = vector.load %arg8[%c1_85, %c0_86, %c0_87] : memref<3x64x128xbf16, #tpu.memory_space<vmem>>, vector<1x64x128xbf16>
    %104 = vector.shape_cast %103 : vector<1x64x128xbf16> to vector<64x128xbf16>
    %c0_88 = arith.constant 0 : index
    %c1_89 = arith.constant 1 : index
    %c0_90 = arith.constant 0 : index
    %105 = tpu.strided_load %arg21[%c0_88, %c1_89, %c0_90] {strides = array<i32: 1, 2, 1>} : memref<8x6x64xf32, #tpu.memory_space<vmem>>, vector<8x2x64xf32>
    %106 = vector.shape_cast %105 : vector<8x2x64xf32> to vector<16x64xf32>
    %107 = arith.truncf %106 : vector<16x64xf32> to vector<16x64xbf16>
    %c0_91 = arith.constant 0 : index
    %c2_92 = arith.constant 2 : index
    %c0_93 = arith.constant 0 : index
    %108 = tpu.strided_load %arg21[%c0_91, %c2_92, %c0_93] {strides = array<i32: 1, 2, 1>} : memref<8x6x64xf32, #tpu.memory_space<vmem>>, vector<8x2x64xf32>
    %109 = vector.shape_cast %108 : vector<8x2x64xf32> to vector<16x64xf32>
    %110 = arith.truncf %109 : vector<16x64xf32> to vector<16x64xbf16>
    %cst_94 = arith.constant dense<0.000000e+00> : vector<16x128xf32>
    %111 = tpu.matmul %107, %104, %cst_94 {dimension_numbers = #tpu.dot_dimension_numbers<[1], [0], [0], [1], [0, 0, 1, 1], [], []>} : vector<16x64xbf16>, vector<64x128xbf16>, vector<16x128xf32> -> vector<16x128xf32>
    %112 = arith.addf %100, %111 : vector<16x128xf32>
    %cst_95 = arith.constant dense<0.000000e+00> : vector<16x128xf32>
    %113 = tpu.matmul %110, %104, %cst_95 {dimension_numbers = #tpu.dot_dimension_numbers<[1], [0], [0], [1], [0, 0, 1, 1], [], []>} : vector<16x64xbf16>, vector<64x128xbf16>, vector<16x128xf32> -> vector<16x128xf32>
    %114 = arith.addf %102, %113 : vector<16x128xf32>
    %c2_96 = arith.constant 2 : index
    %c0_97 = arith.constant 0 : index
    %c0_98 = arith.constant 0 : index
    %115 = vector.load %arg8[%c2_96, %c0_97, %c0_98] : memref<3x64x128xbf16, #tpu.memory_space<vmem>>, vector<1x64x128xbf16>
    %116 = vector.shape_cast %115 : vector<1x64x128xbf16> to vector<64x128xbf16>
    %c0_99 = arith.constant 0 : index
    %c2_100 = arith.constant 2 : index
    %c0_101 = arith.constant 0 : index
    %117 = tpu.strided_load %arg21[%c0_99, %c2_100, %c0_101] {strides = array<i32: 1, 2, 1>} : memref<8x6x64xf32, #tpu.memory_space<vmem>>, vector<8x2x64xf32>
    %118 = vector.shape_cast %117 : vector<8x2x64xf32> to vector<16x64xf32>
    %119 = arith.truncf %118 : vector<16x64xf32> to vector<16x64xbf16>
    %c0_102 = arith.constant 0 : index
    %c3_103 = arith.constant 3 : index
    %c0_104 = arith.constant 0 : index
    %120 = tpu.strided_load %arg21[%c0_102, %c3_103, %c0_104] {strides = array<i32: 1, 2, 1>} : memref<8x6x64xf32, #tpu.memory_space<vmem>>, vector<8x2x64xf32>
    %121 = vector.shape_cast %120 : vector<8x2x64xf32> to vector<16x64xf32>
    %122 = arith.truncf %121 : vector<16x64xf32> to vector<16x64xbf16>
    %cst_105 = arith.constant dense<0.000000e+00> : vector<16x128xf32>
    %123 = tpu.matmul %119, %116, %cst_105 {dimension_numbers = #tpu.dot_dimension_numbers<[1], [0], [0], [1], [0, 0, 1, 1], [], []>} : vector<16x64xbf16>, vector<64x128xbf16>, vector<16x128xf32> -> vector<16x128xf32>
    %124 = arith.addf %112, %123 : vector<16x128xf32>
    %cst_106 = arith.constant dense<0.000000e+00> : vector<16x128xf32>
    %125 = tpu.matmul %122, %116, %cst_106 {dimension_numbers = #tpu.dot_dimension_numbers<[1], [0], [0], [1], [0, 0, 1, 1], [], []>} : vector<16x64xbf16>, vector<64x128xbf16>, vector<16x128xf32> -> vector<16x128xf32>
    %126 = arith.addf %114, %125 : vector<16x128xf32>
    %c0_107 = arith.constant 0 : index
    %c0_108 = arith.constant 0 : index
    %127 = vector.load %arg9[%c0_107, %c0_108] : memref<1x128xf32, #tpu.memory_space<vmem>>, vector<1x128xf32>
    %c0_109 = arith.constant 0 : index
    %c0_110 = arith.constant 0 : index
    %128 = vector.load %arg10[%c0_109, %c0_110] : memref<1x128xf32, #tpu.memory_space<vmem>>, vector<1x128xf32>
    %129 = vector.broadcast %127 : vector<1x128xf32> to vector<16x128xf32>
    %130 = arith.mulf %124, %129 : vector<16x128xf32>
    %131 = vector.broadcast %128 : vector<1x128xf32> to vector<16x128xf32>
    %132 = arith.addf %130, %131 : vector<16x128xf32>
    %cst_111 = arith.constant 0.000000e+00 : f32
    %133 = vector.broadcast %cst_111 : f32 to vector<16x128xf32>
    %134 = arith.maximumf %132, %133 : vector<16x128xf32>
    %135 = vector.broadcast %127 : vector<1x128xf32> to vector<16x128xf32>
    %136 = arith.mulf %126, %135 : vector<16x128xf32>
    %137 = vector.broadcast %128 : vector<1x128xf32> to vector<16x128xf32>
    %138 = arith.addf %136, %137 : vector<16x128xf32>
    %cst_112 = arith.constant 0.000000e+00 : f32
    %139 = vector.broadcast %cst_112 : f32 to vector<16x128xf32>
    %140 = arith.maximumf %138, %139 : vector<16x128xf32>
    %141 = arith.maximumf %134, %140 : vector<16x128xf32>
    %142 = vector.shape_cast %141 : vector<16x128xf32> to vector<8x2x128xf32>
    %cst_113 = arith.constant 0.000000e+00 : f32
    %143 = vector.broadcast %cst_113 : f32 to vector<8x64xf32>
    %144 = vector.extract_strided_slice %142 {offsets = [0, 0, 0], sizes = [8, 1, 128], strides = [1, 1, 1]} : vector<8x2x128xf32> to vector<8x1x128xf32>
    %145 = vector.shape_cast %144 : vector<8x1x128xf32> to vector<8x128xf32>
    %146 = arith.truncf %145 : vector<8x128xf32> to vector<8x128xbf16>
    %c0_114 = arith.constant 0 : index
    %c0_115 = arith.constant 0 : index
    %c0_116 = arith.constant 0 : index
    %147 = vector.load %arg11[%c0_114, %c0_115, %c0_116] : memref<2x128x64xbf16, #tpu.memory_space<vmem>>, vector<1x128x64xbf16>
    %148 = vector.shape_cast %147 : vector<1x128x64xbf16> to vector<128x64xbf16>
    %cst_117 = arith.constant dense<0.000000e+00> : vector<8x64xf32>
    %149 = tpu.matmul %146, %148, %cst_117 {dimension_numbers = #tpu.dot_dimension_numbers<[1], [0], [0], [1], [0, 0, 1, 1], [], []>} : vector<8x128xbf16>, vector<128x64xbf16>, vector<8x64xf32> -> vector<8x64xf32>
    %150 = arith.addf %143, %149 : vector<8x64xf32>
    %151 = vector.extract_strided_slice %142 {offsets = [0, 1, 0], sizes = [8, 1, 128], strides = [1, 1, 1]} : vector<8x2x128xf32> to vector<8x1x128xf32>
    %152 = vector.shape_cast %151 : vector<8x1x128xf32> to vector<8x128xf32>
    %153 = arith.truncf %152 : vector<8x128xf32> to vector<8x128xbf16>
    %c1_118 = arith.constant 1 : index
    %c0_119 = arith.constant 0 : index
    %c0_120 = arith.constant 0 : index
    %154 = vector.load %arg11[%c1_118, %c0_119, %c0_120] : memref<2x128x64xbf16, #tpu.memory_space<vmem>>, vector<1x128x64xbf16>
    %155 = vector.shape_cast %154 : vector<1x128x64xbf16> to vector<128x64xbf16>
    %cst_121 = arith.constant dense<0.000000e+00> : vector<8x64xf32>
    %156 = tpu.matmul %153, %155, %cst_121 {dimension_numbers = #tpu.dot_dimension_numbers<[1], [0], [0], [1], [0, 0, 1, 1], [], []>} : vector<8x128xbf16>, vector<128x64xbf16>, vector<8x64xf32> -> vector<8x64xf32>
    %157 = arith.addf %150, %156 : vector<8x64xf32>
    %c0_122 = arith.constant 0 : index
    %c0_123 = arith.constant 0 : index
    %158 = vector.load %arg12[%c0_122, %c0_123] : memref<1x64xf32, #tpu.memory_space<vmem>>, vector<1x64xf32>
    %159 = vector.broadcast %158 : vector<1x64xf32> to vector<8x64xf32>
    %160 = arith.mulf %157, %159 : vector<8x64xf32>
    %c0_124 = arith.constant 0 : index
    %c0_125 = arith.constant 0 : index
    %161 = vector.load %arg13[%c0_124, %c0_125] : memref<1x64xf32, #tpu.memory_space<vmem>>, vector<1x64xf32>
    %162 = vector.broadcast %161 : vector<1x64xf32> to vector<8x64xf32>
    %163 = arith.addf %160, %162 : vector<8x64xf32>
    %cst_126 = arith.constant 0.000000e+00 : f32
    %164 = vector.broadcast %cst_126 : f32 to vector<8x64xf32>
    %165 = arith.maximumf %163, %164 : vector<8x64xf32>
    %166 = arith.truncf %165 : vector<8x64xf32> to vector<8x64xbf16>
    %c0_127 = arith.constant 0 : index
    %c0_128 = arith.constant 0 : index
    %167 = vector.load %arg14[%c0_127, %c0_128] : memref<64x32xbf16, #tpu.memory_space<vmem>>, vector<64x32xbf16>
    %cst_129 = arith.constant dense<0.000000e+00> : vector<8x32xf32>
    %168 = tpu.matmul %166, %167, %cst_129 {dimension_numbers = #tpu.dot_dimension_numbers<[1], [0], [0], [1], [0, 0, 1, 1], [], []>} : vector<8x64xbf16>, vector<64x32xbf16>, vector<8x32xf32> -> vector<8x32xf32>
    %c0_130 = arith.constant 0 : index
    %c0_131 = arith.constant 0 : index
    %169 = vector.load %arg15[%c0_130, %c0_131] : memref<1x32xf32, #tpu.memory_space<vmem>>, vector<1x32xf32>
    %170 = vector.broadcast %169 : vector<1x32xf32> to vector<8x32xf32>
    %171 = arith.mulf %168, %170 : vector<8x32xf32>
    %c0_132 = arith.constant 0 : index
    %c0_133 = arith.constant 0 : index
    %172 = vector.load %arg16[%c0_132, %c0_133] : memref<1x32xf32, #tpu.memory_space<vmem>>, vector<1x32xf32>
    %173 = vector.broadcast %172 : vector<1x32xf32> to vector<8x32xf32>
    %174 = arith.addf %171, %173 : vector<8x32xf32>
    %cst_134 = arith.constant 0.000000e+00 : f32
    %175 = vector.broadcast %cst_134 : f32 to vector<8x32xf32>
    %176 = arith.maximumf %174, %175 : vector<8x32xf32>
    %177 = arith.truncf %176 : vector<8x32xf32> to vector<8x32xbf16>
    %c0_135 = arith.constant 0 : index
    %c0_136 = arith.constant 0 : index
    %178 = vector.load %arg17[%c0_135, %c0_136] : memref<32x128xbf16, #tpu.memory_space<vmem>>, vector<32x128xbf16>
    %cst_137 = arith.constant dense<0.000000e+00> : vector<8x128xf32>
    %179 = tpu.matmul %177, %178, %cst_137 {dimension_numbers = #tpu.dot_dimension_numbers<[1], [0], [0], [1], [0, 0, 1, 1], [], []>} : vector<8x32xbf16>, vector<32x128xbf16>, vector<8x128xf32> -> vector<8x128xf32>
    %c0_138 = arith.constant 0 : index
    %c0_139 = arith.constant 0 : index
    %180 = vector.load %arg18[%c0_138, %c0_139] : memref<1x128xf32, #tpu.memory_space<vmem>>, vector<1x128xf32>
    %181 = vector.broadcast %180 : vector<1x128xf32> to vector<8x128xf32>
    %182 = arith.addf %179, %181 : vector<8x128xf32>
    %c0_140 = arith.constant 0 : index
    %c0_141 = arith.constant 0 : index
    %183 = vector.load %arg19[%c0_140, %c0_141] : memref<8x128xf32, #tpu.memory_space<vmem>>, vector<8x128xf32>
    tpu.vector_store %arg19[%c0_140, %c0_141], %182 {strides = array<i32>} : memref<8x128xf32, #tpu.memory_space<vmem>>, vector<8x128xf32>,
    return
  }
  func.func @transform_0(%arg0: i32) -> (i32, i32, i32) {
    %c0_i32 = arith.constant 0 : i32
    %c0_i32_0 = arith.constant 0 : i32
    %c0_i32_1 = arith.constant 0 : i32
    return %arg0, %c0_i32, %c0_i32_0 : i32, i32, i32
  }
  func.func @transform_1(%arg0: i32) -> (i32, i32) {
    %c0_i32 = arith.constant 0 : i32
    %c0_i32_0 = arith.constant 0 : i32
    %c0_i32_1 = arith.constant 0 : i32
    return %c0_i32, %c0_i32_0 : i32, i32
  }
  func.func @transform_2(%arg0: i32) -> (i32, i32) {
    %c0_i32 = arith.constant 0 : i32
    %c0_i32_0 = arith.constant 0 : i32
    %c0_i32_1 = arith.constant 0 : i32
    return %c0_i32, %c0_i32_0 : i32, i32
  }
  func.func @transform_3(%arg0: i32) -> (i32, i32) {
    %c0_i32 = arith.constant 0 : i32
    %c0_i32_0 = arith.constant 0 : i32
    %c0_i32_1 = arith.constant 0 : i32
    return %c0_i32, %c0_i32_0 : i32, i32
  }
  func.func @transform_4(%arg0: i32) -> (i32, i32, i32) {
    %c0_i32 = arith.constant 0 : i32
    %c0_i32_0 = arith.constant 0 : i32
    %c0_i32_1 = arith.constant 0 : i32
    %c0_i32_2 = arith.constant 0 : i32
    return %c0_i32, %c0_i32_0, %c0_i32_1 : i32, i32, i32
  }
  func.func @transform_5(%arg0: i32) -> (i32, i32) {
    %c0_i32 = arith.constant 0 : i32
    %c0_i32_0 = arith.constant 0 : i32
    %c0_i32_1 = arith.constant 0 : i32
    return %c0_i32, %c0_i32_0 : i32, i32
  }
  func.func @transform_6(%arg0: i32) -> (i32, i32) {
    %c0_i32 = arith.constant 0 : i32
    %c0_i32_0 = arith.constant 0 : i32
    %c0_i32_1 = arith.constant 0 : i32
    return %c0_i32, %c0_i32_0 : i32, i32
  }
  func.func @transform_7(%arg0: i32) -> (i32, i32, i32) {
    %c0_i32 = arith.constant 0 : i32
    %c0_i32_0 = arith.constant 0 : i32
    %c0_i32_1 = arith.constant 0 : i32
    %c0_i32_2 = arith.constant 0 : i32
    return %c0_i32, %c0_i32_0, %c0_i32_1 : i32, i32, i32
  }
  func.func @transform_8(%arg0: i32) -> (i32, i32) {
    %c0_i32 = arith.constant 0 : i32
    %c0_i32_0 = arith.constant 0 : i32
    %c0_i32_1 = arith.constant 0 : i32
    return %c0_i32, %c0_i32_0 : i32, i32
  }
  func.func @transform_9(%arg0: i32) -> (i32, i32) {
    %c0_i32 = arith.constant 0 : i32
    %c0_i32_0 = arith.constant 0 : i32
    %c0_i32_1 = arith.constant 0 : i32
    return %c0_i32, %c0_i32_0 : i32, i32
  }
  func.func @transform_10(%arg0: i32) -> (i32, i32, i32) {
    %c0_i32 = arith.constant 0 : i32
    %c0_i32_0 = arith.constant 0 : i32
    %c0_i32_1 = arith.constant 0 : i32
    %c0_i32_2 = arith.constant 0 : i32
    return %c0_i32, %c0_i32_0, %c0_i32_1 : i32, i32, i32
  }
  func.func @transform_11(%arg0: i32) -> (i32, i32) {
    %c0_i32 = arith.constant 0 : i32
    %c0_i32_0 = arith.constant 0 : i32
    %c0_i32_1 = arith.constant 0 : i32
    return %c0_i32, %c0_i32_0 : i32, i32
  }
  func.func @transform_12(%arg0: i32) -> (i32, i32) {
    %c0_i32 = arith.constant 0 : i32
    %c0_i32_0 = arith.constant 0 : i32
    %c0_i32_1 = arith.constant 0 : i32
    return %c0_i32, %c0_i32_0 : i32, i32
  }
  func.func @transform_13(%arg0: i32) -> (i32, i32) {
    %c0_i32 = arith.constant 0 : i32
    %c0_i32_0 = arith.constant 0 : i32
    %c0_i32_1 = arith.constant 0 : i32
    return %c0_i32, %c0_i32_0 : i32, i32
  }
  func.func @transform_14(%arg0: i32) -> (i32, i32) {
    %c0_i32 = arith.constant 0 : i32
    %c0_i32_0 = arith.constant 0 : i32
    %c0_i32_1 = arith.constant 0 : i32
    return %c0_i32, %c0_i32_0 : i32, i32
  }
  func.func @transform_15(%arg0: i32) -> (i32, i32) {
    %c0_i32 = arith.constant 0 : i32
    %c0_i32_0 = arith.constant 0 : i32
    %c0_i32_1 = arith.constant 0 : i32
    return %c0_i32, %c0_i32_0 : i32, i32
  }
  func.func @transform_16(%arg0: i32) -> (i32, i32) {
    %c0_i32 = arith.constant 0 : i32
    %c0_i32_0 = arith.constant 0 : i32
    %c0_i32_1 = arith.constant 0 : i32
    return %c0_i32, %c0_i32_0 : i32, i32
  }
  func.func @transform_17(%arg0: i32) -> (i32, i32) {
    %c0_i32 = arith.constant 0 : i32
    %c0_i32_0 = arith.constant 0 : i32
    %c0_i32_1 = arith.constant 0 : i32
    return %c0_i32, %c0_i32_0 : i32, i32
  }
  func.func @transform_18(%arg0: i32) -> (i32, i32) {
    %c0_i32 = arith.constant 0 : i32
    %c0_i32_0 = arith.constant 0 : i32
    return %arg0, %c0_i32 : i32, i32
  }
}

</mosaic_0001>

<bundles_post_ra>
// kernel: forward.1
= control target key start
LH: loop header
LB: loop body
LE: loop exit
PB: predicated region body
PF: predicated region fallthrough
CT: control target
= control target key end

     0   :  { %vm113_vm0 = vcmask 1043456   ;;  %vm100_vm1 = vcmask 64512   ;;  %vm329_vm2 = vcmask 253952   ;;  %v2579_v26 = vmov 0.0   ;;  %s3162_s1 = inlined_call_operand.vmem [shape: bf16[8,32], index: 1, kind: input, shape index: {}]   ;;  %s3163_s0 = inlined_call_operand.vmem [shape: f32[8,16,8], index: 0, kind: input, shape index: {}]   ;;  %s3164_s4 = inlined_call_operand.vmem [shape: bf16[3,32,64], index: 4, kind: input, shape index: {}]   ;;  %s3165_s2 = inlined_call_operand.vmem [shape: f32[1,32], index: 2, kind: input, shape index: {}]   ;;  %s3166_s3 = inlined_call_operand.vmem [shape: f32[1,32], index: 3, kind: input, shape index: {}]   ;;  %s3167_s7 = inlined_call_operand.vmem [shape: bf16[3,64,128], index: 7, kind: input, shape index: {}]   ;;  %s3168_s5 = inlined_call_operand.vmem [shape: f32[1,64], index: 5, kind: input, shape index: {}]   ;;  %s3169_s6 = inlined_call_operand.vmem [shape: f32[1,64], index: 6, kind: input, shape index: {}]   ;;  %s3170_s10 = inlined_call_operand.vmem [shape: bf16[2,128,64], index: 10, kind: input, shape index: {}]   ;;  %s3171_s13 = inlined_call_operand.vmem [shape: bf16[64,32], index: 13, kind: input, shape index: {}]   ;;  %s3172_s8 = inlined_call_operand.vmem [shape: f32[1,128], index: 8, kind: input, shape index: {}]   ;;  %s3173_s9 = inlined_call_operand.vmem [shape: f32[1,128], index: 9, kind: input, shape index: {}]   ;;  %s3174_s11 = inlined_call_operand.vmem [shape: f32[1,64], index: 11, kind: input, shape index: {}]   ;;  %s3175_s12 = inlined_call_operand.vmem [shape: f32[1,64], index: 12, kind: input, shape index: {}]   ;;  %s3176_s16 = inlined_call_operand.vmem [shape: bf16[32,128], index: 16, kind: input, shape index: {}]   ;;  %s3177_s14 = inlined_call_operand.vmem [shape: f32[1,32], index: 14, kind: input, shape index: {}]   ;;  %s3178_s15 = inlined_call_operand.vmem [shape: f32[1,32], index: 15, kind: input, shape index: {}]   ;;  %s3179_s17 = inlined_call_operand.vmem [shape: f32[1,128], index: 17, kind: input, shape index: {}]   ;;  %s3180_s18 = inlined_call_operand.vmem [shape: f32[8,128], index: 18, kind: output, shape index: {}]  }
   0x1   :  { %3183 = sst [smem:[#allocation4_spill]] %s3162_s1  ;;  %330 = vst.msk [vmem:[#allocation2] sm:$0x1] %vm329_vm2, %v2579_v26  ;;  %331 = vst.msk [vmem:[#allocation2 + $0x10] sm:$0x1] %vm329_vm2, %v2579_v26  ;;  %vm346_vm3 = vcmask 261120  }
   0x2   :  { %3184 = sst [smem:[#allocation5_spill]] %s3163_s0  ;;  %s3186_s29 = sld [smem:[#allocation4_spill]]  ;;  %332 = vst.msk [vmem:[#allocation2 + $0x20] sm:$0x1] %vm329_vm2, %v2579_v26  ;;  %333 = vst.msk [vmem:[#allocation2 + $0x30] sm:$0x1] %vm329_vm2, %v2579_v26 }
   0x3   :  { %3185 = sst [smem:[#allocation6_spill]] %s3164_s4  ;;  %s3187_s19 = sld [smem:[#allocation5_spill]]  ;;  %334 = vst.msk [vmem:[#allocation2 + $0x40] sm:$0x1] %vm329_vm2, %v2579_v26  ;;  %335 = vst.msk [vmem:[#allocation2 + $0x50] sm:$0x1] %vm329_vm2, %v2579_v26 }
   0x4   :  { %336 = vst.msk [vmem:[#allocation2 + $0x60] sm:$0x1] %vm329_vm2, %v2579_v26  ;;  %337 = vst.msk [vmem:[#allocation2 + $0x70] sm:$0x1] %vm329_vm2, %v2579_v26  ;;  %s3188_s22 = sld [smem:[#allocation6_spill]]  ;;  %vm2580_vm4 = vmmov 0  }
   0x5   :  { %338 = vst.msk [vmem:[#allocation2 + $0x9] sm:$0x1] %vm329_vm2, %v2579_v26  ;;  %339 = vst.msk [vmem:[#allocation2 + $0x19] sm:$0x1] %vm329_vm2, %v2579_v26  ;;  %v2784_v30 = vld [vmem:[%s3165_s2] ss:$0 sm:$0xff] }
   0x6   :  { %340 = vst.msk [vmem:[#allocation2 + $0x29] sm:$0x1] %vm329_vm2, %v2579_v26  ;;  %341 = vst.msk [vmem:[#allocation2 + $0x39] sm:$0x1] %vm329_vm2, %v2579_v26  ;;  %v2789_v32 = vld [vmem:[%s3166_s3] ss:$0 sm:$0xff] }
   0x7   :  { %342 = vst.msk [vmem:[#allocation2 + $0x49] sm:$0x1] %vm329_vm2, %v2579_v26  ;;  %343 = vst.msk [vmem:[#allocation2 + $0x59] sm:$0x1] %vm329_vm2, %v2579_v26  ;;  %vm908_vm5 = vcmask 516096   ;;  %vm937_vm6 = vcmask 519168  }
   0x8   :  { %v60_v0 = vld [vmem:[%s3186_s29] sm:$0xf]  ;;  %344 = vst.msk [vmem:[#allocation2 + $0x69] sm:$0x1] %vm329_vm2, %v2579_v26  ;;  %345 = vst.msk [vmem:[#allocation2 + $0x79] sm:$0x1] %vm329_vm2, %v2579_v26 }
   0x9   :  { %v61_v1 = vld [vmem:[%s3187_s19] ss:$2 sm:$0xff]  ;;  %v2076_v2 = vld [vmem:[%s3187_s19 + $0x10] ss:$2 sm:$0xff]  ;;  %2534 = vmatprep.subr.msk.bf16.mxu0 %vm113_vm0, %v60_v0  ;;  %2535 = vmatprep.subr.msk.bf16.mxu1 %vm113_vm0, %v60_v0  ;;  %v115_v3 = vsel %vm113_vm0, %v60_v0, 0  ;;  %vm1169_vm7 = vcmask 523264  }
   0xa   :  { %v76_v4 = vpack.c.bf16 %v2076_v2, %v61_v1  ;;  %v2083_v5 = vld [vmem:[%s3187_s19 + $0x1] ss:$2 sm:$0xff]  ;;  %v2084_v6 = vld [vmem:[%s3187_s19 + $0x11] ss:$2 sm:$0xff]  ;;  %2301 = vmatpush3.bf16.msra.mxu0 %v115_v3  ;;  %2311 = vmatpush3.bf16.msra.mxu1 %v115_v3  ;;  %v2077_v8 = vld [vmem:[%s3187_s19 + $0x20] ss:$2 sm:$0xff] }
   0xb   :  { %v96_v7 = vpack.c.bf16 %v2084_v6, %v2083_v5  ;;  %v2078_v9 = vld [vmem:[%s3187_s19 + $0x30] ss:$2 sm:$0xff]  ;;  %v2085_v10 = vld [vmem:[%s3187_s19 + $0x21] ss:$2 sm:$0xff]  ;;  %v2086_v12 = vld [vmem:[%s3187_s19 + $0x31] ss:$2 sm:$0xff] }
   0xc   :  { %2302 = vmatprep.mubr.msk.bf16.mxu0 %vm100_vm1, %v76_v4  ;;  %v77_v11 = vpack.c.bf16 %v2078_v9, %v2077_v8  ;;  %v2079_v13 = vld [vmem:[%s3187_s19 + $0x40] ss:$2 sm:$0xff]  ;;  %v2080_v14 = vld [vmem:[%s3187_s19 + $0x50] ss:$2 sm:$0xff]  ;;  %v97_v15 = vpack.c.bf16 %v2086_v12, %v2085_v10  ;;  %v2087_v17 = vld [vmem:[%s3187_s19 + $0x41] ss:$2 sm:$0xff] }
   0xd   :  { %2312 = vmatprep.mubr.msk.bf16.mxu1 %vm100_vm1, %v96_v7  ;;  %v78_v16 = vpack.c.bf16 %v2080_v14, %v2079_v13  ;;  %v2088_v18 = vld [vmem:[%s3187_s19 + $0x51] ss:$2 sm:$0xff]  ;;  %v2081_v20 = vld [vmem:[%s3187_s19 + $0x60] ss:$2 sm:$0xff]  ;;  %v2082_v21 = vld [vmem:[%s3187_s19 + $0x70] ss:$2 sm:$0xff] }
   0xe   :  { %2303 = vmatmul.mubr.msk.bf16.vlgmr.msra.gmra.mrb[0].mxu0 %vm100_vm1, %v77_v11  ;;  %v98_v19 = vpack.c.bf16 %v2088_v18, %v2087_v17  ;;  %2313 = vmatmul.mubr.msk.bf16.vlgmr.msra.gmra.mrb[0].mxu1 %vm100_vm1, %v97_v15  ;;  %v2089_v22 = vld [vmem:[%s3187_s19 + $0x61] ss:$2 sm:$0xff]  ;;  %v2090_v23 = vld [vmem:[%s3187_s19 + $0x71] ss:$2 sm:$0xff]  ;;  %v79_v24 = vpack.c.bf16 %v2082_v21, %v2081_v20  ;;  %909 = vst.msk [vmem:[#allocation3] sm:$0x1] %vm908_vm5, %v2579_v26 }
   0xf   :  { %2306 = vmatprep.mubr.msk.bf16.mxu0 %vm100_vm1, %v78_v16  ;;  %v99_v25 = vpack.c.bf16 %v2090_v23, %v2089_v22  ;;  %v2539_v27 = vld [vmem:[%s3188_s22 + $0x10] sm:$0xff]   ;;  %v2540_v28 = vld [vmem:[%s3188_s22 + $0x18] sm:$0xff]   ;;  %v2777_v29 = vld [vmem:[%s3188_s22] sm:$0xff]   ;;  %910 = vst.msk [vmem:[#allocation3 + $0x8] sm:$0x1] %vm908_vm5, %v2579_v26  ;;  %vm1680_vm8 = vcmask 1041409  }
  0x10   :  { %2316 = vmatprep.mubr.msk.bf16.mxu1 %vm100_vm1, %v98_v19  ;;  %2320 = vmatprep.subr.bf16.mxu0 %v2539_v27  ;;  %911 = vst.msk [vmem:[#allocation3 + $0x10] sm:$0x1] %vm908_vm5, %v2579_v26  ;;  %912 = vst.msk [vmem:[#allocation3 + $0x18] sm:$0x1] %vm908_vm5, %v2579_v26  ;;  %vm1683_vm9 = vcmask 1042434   ;;  %vm1686_vm10 = vcmask 1043459  }
  0x11   :  { %2336 = vmatprep.subr.bf16.mxu1 %v2539_v27  ;;  %2321 = vmatpush3.bf16.msra.mxu0 %v2539_v27  ;;  %913 = vst.msk [vmem:[#allocation3 + $0x20] sm:$0x1] %vm908_vm5, %v2579_v26  ;;  %914 = vst.msk [vmem:[#allocation3 + $0x28] sm:$0x1] %vm908_vm5, %v2579_v26  ;;  %vm1689_vm11 = vcmask 1044484   ;;  %vm1692_vm12 = vcmask 1045509  }
  0x12   :  { %2337 = vmatpush3.bf16.msra.mxu1 %v2539_v27  ;;  %2322 = vmatprep.subr.bf16.mxu0 %v2540_v28  ;;  %915 = vst.msk [vmem:[#allocation3 + $0x30] sm:$0x1] %vm908_vm5, %v2579_v26  ;;  %916 = vst.msk [vmem:[#allocation3 + $0x38] sm:$0x1] %vm908_vm5, %v2579_v26  ;;  %vm1695_vm13 = vcmask 1046534   ;;  %vm1698_vm14 = vcmask 1047559  }
  0x13   :  { %2338 = vmatprep.subr.bf16.mxu1 %v2540_v28  ;;  %917 = vst.msk [vmem:[#allocation3 + $0x5] sm:$0x1] %vm908_vm5, %v2579_v26  ;;  %918 = vst.msk [vmem:[#allocation3 + $0xd] sm:$0x1] %vm908_vm5, %v2579_v26 }
  0x14   :  { %919 = vst.msk [vmem:[#allocation3 + $0x15] sm:$0x1] %vm908_vm5, %v2579_v26  ;;  %920 = vst.msk [vmem:[#allocation3 + $0x1d] sm:$0x1] %vm908_vm5, %v2579_v26 }
  0x15   :  { %2323 = vmatpush3.bf16.msra.mxu0 %v2540_v28  ;;  %921 = vst.msk [vmem:[#allocation3 + $0x25] sm:$0x1] %vm908_vm5, %v2579_v26  ;;  %922 = vst.msk [vmem:[#allocation3 + $0x2d] sm:$0x1] %vm908_vm5, %v2579_v26 }
  0x16   :  { %2307 = vmatmul.mubr.msk.bf16.gmra.mrb[4].mxu0 %vm100_vm1, %v79_v24  ;;  %2317 = vmatmul.mubr.msk.bf16.gmra.mrb[4].mxu1 %vm100_vm1, %v99_v25  ;;  %923 = vst.msk [vmem:[#allocation3 + $0x35] sm:$0x1] %vm908_vm5, %v2579_v26  ;;  %924 = vst.msk [vmem:[#allocation3 + $0x3d] sm:$0x1] %vm908_vm5, %v2579_v26 }
  0x17   :  { %2339 = vmatpush3.bf16.msra.mxu1 %v2540_v28  ;;  %2328 = vmatprep.subr.bf16.mxu0 %v2777_v29 }
  0x18   :  { %2344 = vmatprep.subr.bf16.mxu1 %v2777_v29 }
  0xe1   :  { %v2304_v31 = vpop.f32.mrb[0].mxu0  ;;  %v2314_v34 = vpop.f32.mrb[0].mxu1 }
  0xe2   :  { %v269_v33 = vmul.f32 %v2304_v31, %v2784_v30  ;;  %v151_v35 = vpop.f32.mrb[1].mxu0  ;;  %v299_v36 = vmul.f32 %v2314_v34, %v2784_v30  ;;  %v228_v38 = vpop.f32.mrb[1].mxu1 }
  0xe3   :  { %v267_v37 = vmul.f32 %v2784_v30, %v151_v35  ;;  %v2305_v39 = vpop.f32.mrb[2].mxu0  ;;  %v297_v41 = vmul.f32 %v2784_v30, %v228_v38  ;;  %v2315_v43 = vpop.f32.mrb[2].mxu1 }
  0xe4   :  { %v283_v40 = vadd.f32 %v2789_v32, %v269_v33  ;;  %v270_v42 = vmul.f32 %v2305_v39, %v2784_v30  ;;  %v154_v44 = vpop.f32.mrb[3].mxu0  ;;  %v307_v45 = vadd.f32 %v2789_v32, %v299_v36  ;;  %v300_v47 = vmul.f32 %v2315_v43, %v2784_v30  ;;  %v231_v49 = vpop.f32.mrb[3].mxu1 }
  0xe5   :  { %v281_v46 = vadd.f32 %v2789_v32, %v267_v37  ;;  %v268_v48 = vmul.f32 %v2784_v30, %v154_v44  ;;  %v305_v51 = vadd.f32 %v2789_v32, %v297_v41  ;;  %v298_v53 = vmul.f32 %v2784_v30, %v231_v49 }
  0xe6   :  { %v291_v50 = vmax.f32 %v283_v40, 0.0  ;;  %v284_v52 = vadd.f32 %v2789_v32, %v270_v42  ;;  %v315_v54 = vmax.f32 %v307_v45, 0.0  ;;  %v308_v56 = vadd.f32 %v2789_v32, %v300_v47 }
  0xe7   :  { %v289_v55 = vmax.f32 %v281_v46, 0.0  ;;  %v282_v57 = vadd.f32 %v2789_v32, %v268_v48  ;;  %v313_v58 = vmax.f32 %v305_v51, 0.0  ;;  %v306_v60 = vadd.f32 %v2789_v32, %v298_v53 }
  0xe8   :  { %v292_v59 = vmax.f32 %v284_v52, 0.0  ;;  %v323_v61 = vmax.f32 %v291_v50, %v315_v54  ;;  %v316_v62 = vmax.f32 %v308_v56, 0.0 }
  0xe9   :  { %v290_v63 = vmax.f32 %v282_v57, 0.0  ;;  %v2308_v0 = vpop.f32.mrb[4].mxu0  ;;  %v321_v1 = vmax.f32 %v289_v55, %v313_v58  ;;  %v314_v2 = vmax.f32 %v306_v60, 0.0  ;;  %v2318_v4 = vpop.f32.mrb[4].mxu1 }
  0xea   :  { %v273_v3 = vmul.f32 %v2308_v0, %v2784_v30  ;;  %v167_v5 = vpop.f32.mrb[5].mxu0  ;;  %349 = vst.msk [vmem:[#allocation2 + $0x21] sm:$0xff] %vm346_vm3, %v323_v61  ;;  %v324_v6 = vmax.f32 %v292_v59, %v316_v62  ;;  %v303_v7 = vmul.f32 %v2318_v4, %v2784_v30  ;;  %v244_v9 = vpop.f32.mrb[5].mxu1 }
  0xeb   :  { %v271_v8 = vmul.f32 %v2784_v30, %v167_v5  ;;  %v2309_v10 = vpop.f32.mrb[6].mxu0  ;;  %347 = vst.msk [vmem:[#allocation2 + $0x1] sm:$0xff] %vm346_vm3, %v321_v1  ;;  %v322_v11 = vmax.f32 %v290_v63, %v314_v2  ;;  %v301_v13 = vmul.f32 %v2784_v30, %v244_v9  ;;  %v2319_v15 = vpop.f32.mrb[6].mxu1 }
  0xec   :  { %v287_v12 = vadd.f32 %v2789_v32, %v273_v3  ;;  %v274_v14 = vmul.f32 %v2309_v10, %v2784_v30  ;;  %v170_v16 = vpop.f32.mrb[7].mxu0  ;;  %350 = vst.msk [vmem:[#allocation2 + $0x31] sm:$0xff] %vm346_vm3, %v324_v6  ;;  %v311_v17 = vadd.f32 %v2789_v32, %v303_v7  ;;  %v304_v19 = vmul.f32 %v2319_v15, %v2784_v30  ;;  %v247_v21 = vpop.f32.mrb[7].mxu1 }
  0xed   :  { %v285_v18 = vadd.f32 %v2789_v32, %v271_v8  ;;  %v272_v20 = vmul.f32 %v2784_v30, %v170_v16  ;;  %348 = vst.msk [vmem:[#allocation2 + $0x11] sm:$0xff] %vm346_vm3, %v322_v11  ;;  %v309_v23 = vadd.f32 %v2789_v32, %v301_v13  ;;  %v302_v25 = vmul.f32 %v2784_v30, %v247_v21 }
  0xee   :  { %v295_v22 = vmax.f32 %v287_v12, 0.0  ;;  %v288_v24 = vadd.f32 %v2789_v32, %v274_v14  ;;  %v319_v27 = vmax.f32 %v311_v17, 0.0  ;;  %v312_v31 = vadd.f32 %v2789_v32, %v304_v19  ;;  %v2542_v12 = vld [vmem:[%s3188_s22 + $0x8] sm:$0xff]   ;;  %v2543_v14 = vld [vmem:[%s3188_s22 + $0x20] sm:$0xff]  }
  0xef   :  { %v293_v28 = vmax.f32 %v285_v18, 0.0  ;;  %v286_v33 = vadd.f32 %v2789_v32, %v272_v20  ;;  %v317_v34 = vmax.f32 %v309_v23, 0.0  ;;  %v310_v36 = vadd.f32 %v2789_v32, %v302_v25 }
  0xf0   :  { %v296_v35 = vmax.f32 %v288_v24, 0.0  ;;  %v327_v37 = vmax.f32 %v295_v22, %v319_v27  ;;  %v320_v38 = vmax.f32 %v312_v31, 0.0 }
  0xf1   :  { %v294_v39 = vmax.f32 %v286_v33, 0.0  ;;  %v325_v40 = vmax.f32 %v293_v28, %v317_v34  ;;  %v318_v41 = vmax.f32 %v310_v36, 0.0  ;;  %v397_v30 = vld [vmem:[#allocation2 + $0x21] ss:$2 sm:$0xf]  ;;  %v2544_v28 = vld [vmem:[%s3188_s22 + $0x28] sm:$0xff]  }
  0xf2   :  { %353 = vst.msk [vmem:[#allocation2 + $0x61] sm:$0xff] %vm346_vm3, %v327_v37  ;;  %v328_v42 = vmax.f32 %v296_v35, %v320_v38  ;;  %v393_v43 = vld [vmem:[#allocation2 + $0x1] ss:$2 sm:$0xf] }
  0xf3   :  { %351 = vst.msk [vmem:[#allocation2 + $0x41] sm:$0xff] %vm346_vm3, %v325_v40  ;;  %v326_v44 = vmax.f32 %v294_v39, %v318_v41  ;;  %v399_v45 = vld [vmem:[#allocation2 + $0x31] ss:$2 sm:$0xf]  ;;  %v2859_v40 = vld [vmem:[%s3167_s7 + $0x20] sm:$0xff]  }
  0xf4   :  { %v432_v46 = vld [vmem:[#allocation2 + $0x2] ss:$2 sm:$0xf]  ;;  %354 = vst.msk [vmem:[#allocation2 + $0x71] sm:$0xff] %vm346_vm3, %v328_v42  ;;  %v417_v48 = vcombine.low %v397_v30, %v399_v45  ;;  %v2888_v30 = vld [vmem:[%s3167_s7 + $0x30] sm:$0xff]   ;;  %v2934_v45 = vld [vmem:[%s3167_s7 + $0x38] sm:$0xff]  }
  0xf5   :  { %v395_v47 = vld [vmem:[#allocation2 + $0x11] ss:$2 sm:$0xf]  ;;  %v434_v32 = vld [vmem:[#allocation2 + $0x12] ss:$2 sm:$0xf] }
  0xf6   :  { %352 = vst.msk [vmem:[#allocation2 + $0x51] sm:$0xff] %vm346_vm3, %v326_v44  ;;  %v416_v49 = vcombine.low %v393_v43, %v395_v47  ;;  %v436_v50 = vld [vmem:[#allocation2 + $0x22] ss:$2 sm:$0xf]  ;;  %v455_v52 = vcombine.low %v432_v46, %v434_v32  ;;  %v2927_v44 = vld [vmem:[%s3167_s7 + $0x10] sm:$0xff]   ;;  %v2941_v46 = vld [vmem:[%s3167_s7 + $0x18] sm:$0xff]  }
  0xf7   :  { %v438_v51 = vld [vmem:[#allocation2 + $0x32] ss:$2 sm:$0xf]  ;;  %v359_v62 = vld [vmem:[#allocation2] ss:$2 sm:$0xf] }
  0xf8   :  { %v456_v53 = vcombine.low %v436_v50, %v438_v51  ;;  %v424_v54 = vpack.c.bf16 %v417_v48, %v416_v49  ;;  %v361_v56 = vld [vmem:[#allocation2 + $0x10] ss:$2 sm:$0xf]  ;;  %v363_v63 = vld [vmem:[#allocation2 + $0x20] ss:$2 sm:$0xf] }
  0xf9   :  { %v365_v57 = vld [vmem:[#allocation2 + $0x30] ss:$2 sm:$0xf]  ;;  %v405_v58 = vld [vmem:[#allocation2 + $0x61] ss:$2 sm:$0xf]  ;;  %v382_v8 = vcombine.low %v359_v62, %v361_v56 }
  0xfa   :  { %v463_v55 = vpack.c.bf16 %v456_v53, %v455_v52  ;;  %2324 = vmatprep.mubr.msk.bf16.mxu0 %vm346_vm3, %v424_v54  ;;  %v444_v59 = vld [vmem:[#allocation2 + $0x62] ss:$2 sm:$0xf]  ;;  %v401_v60 = vld [vmem:[#allocation2 + $0x41] ss:$2 sm:$0xf]  ;;  %v383_v9 = vcombine.low %v363_v63, %v365_v57 }
  0xfb   :  { %v440_v61 = vld [vmem:[#allocation2 + $0x42] ss:$2 sm:$0xf]  ;;  %v407_v0 = vld [vmem:[#allocation2 + $0x71] ss:$2 sm:$0xf] }
  0xfc   :  { %2340 = vmatprep.mubr.msk.bf16.mxu1 %vm346_vm3, %v463_v55  ;;  %v446_v1 = vld [vmem:[#allocation2 + $0x72] ss:$2 sm:$0xf]  ;;  %v419_v3 = vcombine.low %v405_v58, %v407_v0  ;;  %v390_v13 = vpack.c.bf16 %v383_v9, %v382_v8  ;;  %v367_v17 = vld [vmem:[#allocation2 + $0x40] ss:$2 sm:$0xf] }
  0xfd   :  { %v403_v2 = vld [vmem:[#allocation2 + $0x51] ss:$2 sm:$0xf]  ;;  %v442_v4 = vld [vmem:[#allocation2 + $0x52] ss:$2 sm:$0xf]  ;;  %v458_v5 = vcombine.low %v444_v59, %v446_v1 }
  0xfe   :  { %v418_v6 = vcombine.low %v401_v60, %v403_v2  ;;  %v457_v7 = vcombine.low %v440_v61, %v442_v4  ;;  %v369_v15 = vld [vmem:[#allocation2 + $0x50] ss:$2 sm:$0xf]  ;;  %v711_v18 = vld [vmem:[#allocation2 + $0x13] ss:$2 sm:$0xf] }
  0xff   :  { %v373_v16 = vld [vmem:[#allocation2 + $0x70] ss:$2 sm:$0xf]  ;;  %v371_v19 = vld [vmem:[#allocation2 + $0x60] ss:$2 sm:$0xf] }
 0x100   :  { %v425_v10 = vpack.c.bf16 %v419_v3, %v418_v6  ;;  %v464_v11 = vpack.c.bf16 %v458_v5, %v457_v7  ;;  %v715_v20 = vld [vmem:[#allocation2 + $0x33] ss:$2 sm:$0xf]  ;;  %v385_v21 = vcombine.low %v371_v19, %v373_v16  ;;  %v709_v22 = vld [vmem:[#allocation2 + $0x3] ss:$2 sm:$0xf] }
 0x101   :  { %v713_v23 = vld [vmem:[#allocation2 + $0x23] ss:$2 sm:$0xf]  ;;  %v732_v24 = vcombine.low %v709_v22, %v711_v18  ;;  %v719_v33 = vld [vmem:[#allocation2 + $0x53] ss:$2 sm:$0xf] }
 0x102   :  { %2325 = vmatmul.mubr.msk.bf16.vlgmr.msra.gmra.mrb[8].mxu0 %vm346_vm3, %v425_v10  ;;  %2341 = vmatmul.mubr.msk.bf16.vlgmr.msra.gmra.mrb[8].mxu1 %vm346_vm3, %v464_v11  ;;  %v733_v25 = vcombine.low %v713_v23, %v715_v20  ;;  %v723_v34 = vld [vmem:[#allocation2 + $0x73] ss:$2 sm:$0xf]  ;;  %v717_v35 = vld [vmem:[#allocation2 + $0x43] ss:$2 sm:$0xf] }
 0x103   :  { %2329 = vmatpush3.bf16.msra.mxu0 %v2777_v29  ;;  %2345 = vmatpush3.bf16.msra.mxu1 %v2777_v29  ;;  %v384_v29 = vcombine.low %v367_v17, %v369_v15  ;;  %v721_v36 = vld [vmem:[#allocation2 + $0x63] ss:$2 sm:$0xf]  ;;  %v734_v37 = vcombine.low %v717_v35, %v719_v33  ;;  %v2127_v47 = vld [vmem:[%s3168_s5] ss:$0 sm:$0xff] }
 0x104   :  { %2332 = vmatprep.mubr.msk.bf16.mxu0 %vm346_vm3, %v390_v13  ;;  %2348 = vmatprep.mubr.msk.bf16.mxu1 %vm346_vm3, %v424_v54  ;;  %v740_v31 = vpack.c.bf16 %v733_v25, %v732_v24  ;;  %v735_v38 = vcombine.low %v721_v36, %v723_v34  ;;  %v2868_v41 = vld [vmem:[%s3167_s7] sm:$0xff]   ;;  %v2874_v42 = vld [vmem:[%s3167_s7 + $0x28] sm:$0xff]   ;;  %v2581_v22 = vmov 1983009808   ;;  %v982_v24 = vlaneseq }
 0x105   :  { %2330 = vmatprep.subr.bf16.mxu0 %v2542_v12  ;;  %2346 = vmatprep.subr.bf16.mxu1 %v2542_v12  ;;  %v391_v27 = vpack.c.bf16 %v385_v21, %v384_v29  ;;  %v2881_v43 = vld [vmem:[%s3167_s7 + $0x8] sm:$0xff]   ;;  %v2128_v32 = vld [vmem:[%s3169_s6] ss:$0 sm:$0xff]  ;;  %v980_v23 = vunpack.c.l.s4 %v2581_v22 }
 0x106   :  { %v741_v39 = vpack.c.bf16 %v735_v38, %v734_v37 }
 0x107   :  { %2331 = vmatpush3.bf16.msra.mxu0 %v2542_v12  ;;  %2347 = vmatpush3.bf16.msra.mxu1 %v2542_v12 }
 0x108   :  { %2352 = vmatprep.subr.bf16.mxu0 %v2543_v14  ;;  %2360 = vmatprep.subr.bf16.mxu1 %v2543_v14 }
 0x10e   :  { %2333 = vmatmul.mubr.msk.bf16.vlgmr.msra.gmra.mrb[8].mxu0 %vm346_vm3, %v391_v27  ;;  %2349 = vmatmul.mubr.msk.bf16.vlgmr.msra.gmra.mrb[8].mxu1 %vm346_vm3, %v425_v10  ;;  %v981_v27 = vunpack.c.0.s8 %v980_v23 }
 0x10f   :  { %2353 = vmatpush3.bf16.msra.mxu0 %v2543_v14  ;;  %2361 = vmatpush3.bf16.msra.mxu1 %v2543_v14 }
 0x110   :  { %2356 = vmatprep.mubr.msk.bf16.mxu0 %vm346_vm3, %v463_v55  ;;  %2364 = vmatprep.mubr.msk.bf16.mxu1 %vm346_vm3, %v740_v31 }
 0x111   :  { %2354 = vmatprep.subr.bf16.mxu0 %v2544_v28  ;;  %2362 = vmatprep.subr.bf16.mxu1 %v2544_v28 }
 0x113   :  { %2355 = vmatpush3.bf16.msra.mxu0 %v2544_v28  ;;  %2363 = vmatpush3.bf16.msra.mxu1 %v2544_v28  ;;  %v983_v28 = vshrl.u32 %v982_v24, 7 }
 0x114   :  { %2368 = vmatprep.subr.bf16.mxu1 %v2579_v26  ;;  %2380 = vmatprep.subr.bf16.mxu0 %v2579_v26 }
 0x115   :  { %v2962_v37 = vsub.s32 %v981_v27, %v983_v28  ;;  %v2555_v28 = vld [vmem:[%s3167_s7 + $0x50] sm:$0xff]  }
 0x11a   :  { %2357 = vmatmul.mubr.msk.bf16.vlgmr.msra.gmra.mrb[8].mxu0 %vm346_vm3, %v464_v11  ;;  %2365 = vmatmul.mubr.msk.bf16.vlgmr.msra.gmra.mrb[8].mxu1 %vm346_vm3, %v741_v39 }
 0x11b   :  { %2376 = vmatprep.mubr.msk.bf16.mxu1 %vm2580_vm4, %v2579_v26  ;;  %2388 = vmatprep.mubr.msk.bf16.mxu0 %vm2580_vm4, %v2579_v26 }
 0x11c   :  { %2369 = vmatpush3.bf16.msra.mxu1 %v2859_v40  ;;  %2381 = vmatpush3.bf16.msra.mxu0 %v2868_v41 }
 0x11d   :  { %2370 = vmatprep.subr.bf16.mxu1 %v2579_v26  ;;  %2382 = vmatprep.subr.bf16.mxu0 %v2579_v26 }
 0x120   :  { %2371 = vmatpush3.bf16.msra.mxu1 %v2874_v42  ;;  %2383 = vmatpush3.bf16.msra.mxu0 %v2881_v43 }
 0x121   :  { %2372 = vmatprep.subr.bf16.mxu1 %v2579_v26  ;;  %2384 = vmatprep.subr.bf16.mxu0 %v2579_v26 }
 0x124   :  { %2373 = vmatpush3.bf16.msra.mxu1 %v2888_v30  ;;  %2385 = vmatpush3.bf16.msra.mxu0 %v2927_v44 }
 0x125   :  { %2374 = vmatprep.subr.bf16.mxu1 %v2579_v26  ;;  %2386 = vmatprep.subr.bf16.mxu0 %v2579_v26 }
 0x128   :  { %2375 = vmatpush3.bf16.msra.mxu1 %v2934_v45  ;;  %2387 = vmatpush3.bf16.msra.mxu0 %v2941_v46 }
 0x129   :  { %2392 = vmatprep.subr.bf16.mxu1 %v2579_v26  ;;  %2416 = vmatprep.subr.bf16.mxu0 %v2579_v26 }
 0x1ed   :  { %v2358_v48 = vpop.f32.mrb[8].mxu0  ;;  %v2366_v49 = vpop.f32.mrb[8].mxu1 }
 0x1ee   :  { %v876_v50 = vmul.f32 %v2358_v48, %v2127_v47  ;;  %v894_v51 = vmul.f32 %v2366_v49, %v2127_v47  ;;  %v788_v52 = vpop.f32.mrb[9].mxu0  ;;  %v847_v53 = vpop.f32.mrb[9].mxu1 }
 0x1ef   :  { %v874_v54 = vmul.f32 %v2127_v47, %v788_v52  ;;  %v892_v55 = vmul.f32 %v2127_v47, %v847_v53  ;;  %v2359_v56 = vpop.f32.mrb[10].mxu0  ;;  %v2367_v57 = vpop.f32.mrb[10].mxu1 }
 0x1f0   :  { %v886_v58 = vadd.f32 %v2128_v32, %v876_v50  ;;  %v898_v59 = vadd.f32 %v2128_v32, %v894_v51  ;;  %v877_v60 = vmul.f32 %v2359_v56, %v2127_v47  ;;  %v895_v61 = vmul.f32 %v2367_v57, %v2127_v47  ;;  %v791_v62 = vpop.f32.mrb[11].mxu0  ;;  %v850_v63 = vpop.f32.mrb[11].mxu1 }
 0x1f1   :  { %v884_v0 = vadd.f32 %v2128_v32, %v874_v54  ;;  %v896_v1 = vadd.f32 %v2128_v32, %v892_v55  ;;  %v875_v2 = vmul.f32 %v2127_v47, %v791_v62  ;;  %v893_v3 = vmul.f32 %v2127_v47, %v850_v63 }
 0x1f2   :  { %v890_v4 = vmax.f32 %v886_v58, 0.0  ;;  %v902_v5 = vmax.f32 %v898_v59, 0.0  ;;  %v887_v6 = vadd.f32 %v2128_v32, %v877_v60  ;;  %v899_v7 = vadd.f32 %v2128_v32, %v895_v61 }
 0x1f3   :  { %v888_v8 = vmax.f32 %v884_v0, 0.0  ;;  %v900_v9 = vmax.f32 %v896_v1, 0.0  ;;  %v885_v10 = vadd.f32 %v2128_v32, %v875_v2  ;;  %v897_v11 = vadd.f32 %v2128_v32, %v893_v3 }
 0x1f4   :  { %v906_v12 = vmax.f32 %v890_v4, %v902_v5  ;;  %v891_v13 = vmax.f32 %v887_v6, 0.0  ;;  %v903_v14 = vmax.f32 %v899_v7, 0.0 }
 0x1f5   :  { %v904_v15 = vmax.f32 %v888_v8, %v900_v9  ;;  %v889_v16 = vmax.f32 %v885_v10, 0.0  ;;  %v901_v17 = vmax.f32 %v897_v11, 0.0 }
 0x1f6   :  { %v931_v18 = vcombine.high %v906_v12, %v906_v12  ;;  %942 = vst.msk [vmem:[#allocation3 + $0x21] sm:$0xf] %vm937_vm6, %v906_v12  ;;  %v907_v19 = vmax.f32 %v891_v13, %v903_v14  ;;  %v2553_v12 = vld [vmem:[%s3167_s7 + $0x40] sm:$0xff]  }
 0x1f7   :  { %v929_v20 = vcombine.high %v904_v15, %v904_v15  ;;  %938 = vst.msk [vmem:[#allocation3 + $0x1] sm:$0xf] %vm937_vm6, %v904_v15  ;;  %v905_v29 = vmax.f32 %v889_v16, %v901_v17 }
 0x1f8   :  { %943 = vst.msk [vmem:[#allocation3 + $0x29] sm:$0xf] %vm937_vm6, %v931_v18  ;;  %v932_v21 = vcombine.high %v907_v19, %v907_v19  ;;  %944 = vst.msk [vmem:[#allocation3 + $0x31] sm:$0xf] %vm937_vm6, %v907_v19 }
 0x1f9   :  { %939 = vst.msk [vmem:[#allocation3 + $0x9] sm:$0xf] %vm937_vm6, %v929_v20  ;;  %v930_v25 = vcombine.high %v905_v29, %v905_v29  ;;  %940 = vst.msk [vmem:[#allocation3 + $0x11] sm:$0xf] %vm937_vm6, %v905_v29  ;;  %v2554_v20 = vld [vmem:[%s3167_s7 + $0x48] sm:$0xff]  }
 0x1fa   :  { %945 = vst.msk [vmem:[#allocation3 + $0x39] sm:$0xf] %vm937_vm6, %v932_v21 }
 0x1fb   :  { %941 = vst.msk [vmem:[#allocation3 + $0x19] sm:$0xf] %vm937_vm6, %v930_v25 }
 0x1fd   :  { %v1023_v33 = vld [vmem:[#allocation3 + $0x21] ss:$2 sm:$0x3]  ;;  %v962_v50 = vld [vmem:[#allocation3 + $0x20] ss:$2 sm:$0x3] }
 0x1fe   :  { %v1015_v31 = vld [vmem:[#allocation3 + $0x1] ss:$2 sm:$0x3]  ;;  %v954_v36 = vld [vmem:[#allocation3] ss:$2 sm:$0x3] }
 0x1ff   :  { %v1025_v34 = vld [vmem:[#allocation3 + $0x29] ss:$2 sm:$0x3]  ;;  %v1027_v35 = vld [vmem:[#allocation3 + $0x31] ss:$2 sm:$0x3] }
 0x200   :  { %v1017_v38 = vld [vmem:[#allocation3 + $0x9] ss:$2 sm:$0x3]  ;;  %v1019_v39 = vld [vmem:[#allocation3 + $0x11] ss:$2 sm:$0x3]  ;;  %v1055_v47 = vcombine.low %v1023_v33, %v1025_v34 }
 0x201   :  { %v1029_v48 = vld [vmem:[#allocation3 + $0x39] ss:$2 sm:$0x3]  ;;  %v1038_v32 = vcombine.low %v1015_v31, %v1017_v38  ;;  %v956_v49 = vld [vmem:[#allocation3 + $0x8] ss:$2 sm:$0x3] }
 0x202   :  { %v1021_v51 = vld [vmem:[#allocation3 + $0x19] ss:$2 sm:$0x3]  ;;  %v1056_v52 = vcombine.low %v1027_v35, %v1029_v48  ;;  %v958_v53 = vld [vmem:[#allocation3 + $0x10] ss:$2 sm:$0x3]  ;;  %v977_v54 = vcombine.low %v954_v36, %v956_v49  ;;  %v1063_v58 = vrot.slane %v1055_v47, %v2962_v37 }
 0x203   :  { %v1039_v55 = vcombine.low %v1019_v39, %v1021_v51  ;;  %v960_v56 = vld [vmem:[#allocation3 + $0x18] ss:$2 sm:$0x3]  ;;  %v964_v57 = vld [vmem:[#allocation3 + $0x28] ss:$2 sm:$0x3]  ;;  %v1046_v0 = vrot.slane %v1038_v32, %v2962_v37 }
 0x204   :  { %v1070_v59 = vrot.slane %v1056_v52, %v2962_v37  ;;  %v966_v60 = vld [vmem:[#allocation3 + $0x30] ss:$2 sm:$0x3]  ;;  %v968_v61 = vld [vmem:[#allocation3 + $0x38] ss:$2 sm:$0x3]  ;;  %v978_v62 = vcombine.low %v958_v53, %v960_v56  ;;  %v994_v63 = vcombine.low %v962_v50, %v964_v57  ;;  %v985_v4 = vrot.slane %v977_v54, %v2962_v37 }
 0x205   :  { %v1053_v1 = vrot.slane %v1039_v55, %v2962_v37  ;;  %v995_v2 = vcombine.low %v966_v60, %v968_v61  ;;  %v1091_v13 = vld [vmem:[#allocation3 + $0x1a] ss:$2 sm:$0x3]  ;;  %v1087_v16 = vld [vmem:[#allocation3 + $0xa] ss:$2 sm:$0x3] }
 0x206   :  { %v1071_v3 = vcombine.low %v1063_v58, %v1070_v59  ;;  %v992_v5 = vrot.slane %v978_v62, %v2962_v37  ;;  %v1002_v7 = vrot.slane %v994_v63, %v2962_v37  ;;  %v1099_v14 = vld [vmem:[#allocation3 + $0x3a] ss:$2 sm:$0x3]  ;;  %v1089_v17 = vld [vmem:[#allocation3 + $0x12] ss:$2 sm:$0x3] }
 0x207   :  { %v1054_v6 = vcombine.low %v1046_v0, %v1053_v1  ;;  %v1009_v8 = vrot.slane %v995_v2, %v2962_v37  ;;  %v1095_v18 = vld [vmem:[#allocation3 + $0x2a] ss:$2 sm:$0x3]  ;;  %v1097_v19 = vld [vmem:[#allocation3 + $0x32] ss:$2 sm:$0x3]  ;;  %v1109_v29 = vcombine.low %v1089_v17, %v1091_v13 }
 0x208   :  { %v993_v9 = vcombine.low %v985_v4, %v992_v5  ;;  %v1126_v21 = vcombine.low %v1097_v19, %v1099_v14  ;;  %v1093_v22 = vld [vmem:[#allocation3 + $0x22] ss:$2 sm:$0x3]  ;;  %v2556_v35 = vld [vmem:[%s3167_s7 + $0x58] sm:$0xff]   ;;  %v2558_v58 = vld [vmem:[%s3170_s10 + $0x48] sm:$0xff]  }
 0x209   :  { %v1074_v10 = vpack.c.bf16 %v1071_v3, %v1054_v6  ;;  %v1010_v11 = vcombine.low %v1002_v7, %v1009_v8  ;;  %v1125_v24 = vcombine.low %v1093_v22, %v1095_v18  ;;  %v1123_v25 = vrot.slane %v1109_v29, %v2962_v37  ;;  %v1381_v38 = vld [vmem:[#allocation3 + $0x13] ss:$2 sm:$0x3]  ;;  %v1377_v48 = vld [vmem:[#allocation3 + $0x3] ss:$2 sm:$0x3] }
 0x20a   :  { %v1140_v27 = vrot.slane %v1126_v21, %v2962_v37  ;;  %v1389_v39 = vld [vmem:[#allocation3 + $0x33] ss:$2 sm:$0x3]  ;;  %v2557_v57 = vld [vmem:[%s3170_s10 + $0x40] sm:$0xff]   ;;  %v2560_v60 = vld [vmem:[%s3170_s10 + $0x58] sm:$0xff]  }
 0x20b   :  { %2377 = vmatmul.mubr.msk.bf16.vlgmr.msra.gmra.mrb[12].mxu1 %vm1169_vm7, %v1074_v10  ;;  %v1013_v15 = vpack.c.bf16 %v1010_v11, %v993_v9  ;;  %v1133_v33 = vrot.slane %v1125_v24, %v2962_v37  ;;  %v2559_v59 = vld [vmem:[%s3170_s10 + $0x50] sm:$0xff]   ;;  %v2561_v61 = vld [vmem:[%s3170_s10 + $0x60] sm:$0xff]   ;;  %v2562_v62 = vld [vmem:[%s3170_s10 + $0x68] sm:$0xff]  }
 0x20c   :  { %2393 = vmatpush3.bf16.msra.mxu1 %v2859_v40  ;;  %2400 = vmatprep.mubr.msk.bf16.mxu1 %vm2580_vm4, %v2579_v26  ;;  %v1085_v40 = vld [vmem:[#allocation3 + $0x2] ss:$2 sm:$0x3]  ;;  %v2563_v63 = vld [vmem:[%s3170_s10 + $0x70] sm:$0xff]   ;;  %v2564_v0 = vld [vmem:[%s3170_s10 + $0x78] sm:$0xff]  }
 0x20d   :  { %2389 = vmatmul.mubr.msk.bf16.vlgmr.msra.gmra.mrb[12].mxu0 %vm1169_vm7, %v1013_v15  ;;  %2394 = vmatprep.subr.bf16.mxu1 %v2579_v26  ;;  %v1108_v23 = vcombine.low %v1085_v40, %v1087_v16  ;;  %v1141_v34 = vcombine.low %v1133_v33, %v1140_v27  ;;  %v2573_v1 = vld [vmem:[%s3171_s13] sm:$0xff]   ;;  %v2574_v2 = vld [vmem:[%s3171_s13 + $0x8] sm:$0xff]  }
 0x20e   :  { %2417 = vmatpush3.bf16.msra.mxu0 %v2553_v12  ;;  %2424 = vmatprep.mubr.msk.bf16.mxu0 %vm2580_vm4, %v2579_v26  ;;  %v2163_v13 = vld [vmem:[%s3172_s8] ss:$0 sm:$0xff] }
 0x20f   :  { %2418 = vmatprep.subr.bf16.mxu0 %v2579_v26  ;;  %v1116_v31 = vrot.slane %v1108_v23, %v2962_v37  ;;  %v2164_v15 = vld [vmem:[%s3173_s9] ss:$0 sm:$0xff] }
 0x210   :  { %2395 = vmatpush3.bf16.msra.mxu1 %v2874_v42 }
 0x211   :  { %2396 = vmatprep.subr.bf16.mxu1 %v2579_v26  ;;  %v1124_v42 = vcombine.low %v1116_v31, %v1123_v25 }
 0x212   :  { %2419 = vmatpush3.bf16.msra.mxu0 %v2554_v20 }
 0x213   :  { %2420 = vmatprep.subr.bf16.mxu0 %v2579_v26  ;;  %v1144_v36 = vpack.c.bf16 %v1141_v34, %v1124_v42 }
 0x214   :  { %2397 = vmatpush3.bf16.msra.mxu1 %v2888_v30  ;;  %v1391_v30 = vld [vmem:[#allocation3 + $0x3b] ss:$2 sm:$0x3] }
 0x215   :  { %2398 = vmatprep.subr.bf16.mxu1 %v2579_v26  ;;  %v1418_v47 = vcombine.low %v1389_v39, %v1391_v30 }
 0x216   :  { %2421 = vmatpush3.bf16.msra.mxu0 %v2555_v28 }
 0x217   :  { %2422 = vmatprep.subr.bf16.mxu0 %v2579_v26  ;;  %v1432_v51 = vrot.slane %v1418_v47, %v2962_v37 }
 0x218   :  { %2399 = vmatpush3.bf16.msra.mxu1 %v2934_v45  ;;  %v1379_v45 = vld [vmem:[#allocation3 + $0xb] ss:$2 sm:$0x3] }
 0x219   :  { %2404 = vmatprep.subr.bf16.mxu1 %v2579_v26  ;;  %v1400_v32 = vcombine.low %v1377_v48, %v1379_v45 }
 0x21a   :  { %2423 = vmatpush3.bf16.msra.mxu0 %v2556_v35 }
 0x21b   :  { %2401 = vmatmul.mubr.msk.bf16.vlgmr.msra.gmra.mrb[16].mxu1 %vm1169_vm7, %v1144_v36  ;;  %2440 = vmatprep.subr.bf16.mxu0 %v2579_v26  ;;  %v1408_v52 = vrot.slane %v1400_v32, %v2962_v37 }
 0x21c   :  { %2405 = vmatpush3.bf16.msra.mxu1 %v2868_v41  ;;  %2412 = vmatprep.mubr.msk.bf16.mxu1 %vm2580_vm4, %v2579_v26  ;;  %v1383_v41 = vld [vmem:[#allocation3 + $0x1b] ss:$2 sm:$0x3] }
 0x21d   :  { %2425 = vmatmul.mubr.msk.bf16.vlgmr.msra.gmra.mrb[12].mxu0 %vm1169_vm7, %v1144_v36  ;;  %2406 = vmatprep.subr.bf16.mxu1 %v2579_v26 }
 0x21e   :  { %2456 = vmatprep.mubr.msk.bf16.mxu0 %vm2580_vm4, %v2579_v26  ;;  %2441 = vmatpush3.bf16.msra.mxu0 %v2557_v57 }
 0x21f   :  { %2442 = vmatprep.subr.bf16.mxu0 %v2579_v26 }
 0x220   :  { %2407 = vmatpush3.bf16.msra.mxu1 %v2881_v43  ;;  %v1387_v43 = vld [vmem:[#allocation3 + $0x2b] ss:$2 sm:$0x3] }
 0x221   :  { %2408 = vmatprep.subr.bf16.mxu1 %v2579_v26 }
 0x222   :  { %2443 = vmatpush3.bf16.msra.mxu0 %v2558_v58 }
 0x223   :  { %2444 = vmatprep.subr.bf16.mxu0 %v2579_v26 }
 0x224   :  { %2409 = vmatpush3.bf16.msra.mxu1 %v2927_v44  ;;  %v1401_v44 = vcombine.low %v1381_v38, %v1383_v41 }
 0x225   :  { %2410 = vmatprep.subr.bf16.mxu1 %v2579_v26 }
 0x226   :  { %v1415_v50 = vrot.slane %v1401_v44, %v2962_v37  ;;  %2445 = vmatpush3.bf16.msra.mxu0 %v2559_v59 }
 0x227   :  { %2446 = vmatprep.subr.bf16.mxu0 %v2579_v26 }
 0x228   :  { %2411 = vmatpush3.bf16.msra.mxu1 %v2941_v46  ;;  %v1385_v46 = vld [vmem:[#allocation3 + $0x23] ss:$2 sm:$0x3]  ;;  %v1416_v54 = vcombine.low %v1408_v52, %v1415_v50 }
 0x229   :  { %2428 = vmatprep.subr.bf16.mxu1 %v2579_v26  ;;  %v1417_v49 = vcombine.low %v1385_v46, %v1387_v43 }
 0x22a   :  { %2447 = vmatpush3.bf16.msra.mxu0 %v2560_v60 }
 0x22b   :  { %2413 = vmatmul.mubr.msk.bf16.vlgmr.msra.gmra.mrb[16].mxu1 %vm1169_vm7, %v1074_v10  ;;  %v1425_v53 = vrot.slane %v1417_v49, %v2962_v37  ;;  %2448 = vmatprep.subr.bf16.mxu0 %v2579_v26 }
 0x22c   :  { %2429 = vmatpush3.bf16.msra.mxu1 %v2553_v12  ;;  %2436 = vmatprep.mubr.msk.bf16.mxu1 %vm2580_vm4, %v2579_v26 }
 0x22d   :  { %2430 = vmatprep.subr.bf16.mxu1 %v2579_v26  ;;  %v1433_v55 = vcombine.low %v1425_v53, %v1432_v51 }
 0x22e   :  { %2449 = vmatpush3.bf16.msra.mxu0 %v2561_v61 }
 0x22f   :  { %v1436_v56 = vpack.c.bf16 %v1433_v55, %v1416_v54  ;;  %2450 = vmatprep.subr.bf16.mxu0 %v2579_v26 }
 0x230   :  { %2431 = vmatpush3.bf16.msra.mxu1 %v2554_v20 }
 0x231   :  { %2432 = vmatprep.subr.bf16.mxu1 %v2579_v26 }
 0x232   :  { %2451 = vmatpush3.bf16.msra.mxu0 %v2562_v62 }
 0x233   :  { %2452 = vmatprep.subr.bf16.mxu0 %v2579_v26 }
 0x234   :  { %2433 = vmatpush3.bf16.msra.mxu1 %v2555_v28 }
 0x235   :  { %2434 = vmatprep.subr.bf16.mxu1 %v2579_v26 }
 0x236   :  { %2453 = vmatpush3.bf16.msra.mxu0 %v2563_v63 }
 0x237   :  { %2454 = vmatprep.subr.bf16.mxu0 %v2579_v26 }
 0x238   :  { %2435 = vmatpush3.bf16.msra.mxu1 %v2556_v35 }
 0x239   :  { %2480 = vmatprep.subr.bf16.mxu1 %v2579_v26 }
 0x23a   :  { %2455 = vmatpush3.bf16.msra.mxu0 %v2564_v0 }
 0x23b   :  { %2437 = vmatmul.mubr.msk.bf16.vlgmr.msra.gmra.mrb[16].mxu1 %vm1169_vm7, %v1436_v56  ;;  %2460 = vmatprep.subr.bf16.mxu0 %v2579_v26 }
 0x23c   :  { %2488 = vmatprep.mubr.msk.bf16.mxu1 %vm2580_vm4, %v2579_v26  ;;  %2481 = vmatpush3.bf16.msra.mxu1 %v2573_v1 }
 0x23d   :  { %2482 = vmatprep.subr.bf16.mxu1 %v2579_v26 }
 0x240   :  { %2483 = vmatpush3.bf16.msra.mxu1 %v2574_v2 }
 0x241   :  { %2484 = vmatprep.subr.bf16.mxu1 %v2579_v26 }
 0x2de   :  { %v1207_v3 = vpop.f32.mrb[12].mxu1 }
 0x2df   :  { %v2378_v4 = vpop.f32.mrb[13].mxu1 }
 0x2e0   :  { %v1210_v5 = vpop.f32.mrb[14].mxu1 }
 0x2e1   :  { %v2379_v6 = vpop.f32.mrb[15].mxu1 }
 0x2f0   :  { %v1495_v7 = vpop.f32.mrb[12].mxu0 }
 0x2f1   :  { %v2500_v8 = vadd.f32 %v1495_v7, %v1207_v3  ;;  %v2426_v9 = vpop.f32.mrb[13].mxu0 }
 0x2f2   :  { %v1498_v10 = vpop.f32.mrb[14].mxu0 }
 0x2f3   :  { %v2501_v11 = vadd.f32 %v1498_v10, %v1210_v5  ;;  %v2427_v12 = vpop.f32.mrb[15].mxu0  ;;  %v1558_v14 = vmul.f32 %v2500_v8, %v2163_v13 }
 0x2f5   :  { %v1559_v16 = vmul.f32 %v2501_v11, %v2163_v13  ;;  %v1566_v18 = vadd.f32 %v2164_v15, %v1558_v14 }
 0x2f7   :  { %v1567_v21 = vadd.f32 %v2164_v15, %v1559_v16  ;;  %v1568_v24 = vmax.f32 %v1566_v18, 0.0 }
 0x2f9   :  { %v1569_v28 = vmax.f32 %v1567_v21, 0.0 }
 0x30e   :  { %v1541_v17 = vpop.f32.mrb[16].mxu1 }
 0x30f   :  { %v1570_v19 = vmul.f32 %v2163_v13, %v1541_v17  ;;  %v2438_v20 = vpop.f32.mrb[17].mxu1 }
 0x310   :  { %v1544_v29 = vpop.f32.mrb[18].mxu1 }
 0x311   :  { %v1572_v40 = vadd.f32 %v2164_v15, %v1570_v19  ;;  %v1571_v22 = vmul.f32 %v2163_v13, %v1544_v29  ;;  %v2439_v23 = vpop.f32.mrb[19].mxu1 }
 0x313   :  { %v1574_v25 = vmax.f32 %v1572_v40, 0.0  ;;  %v1573_v27 = vadd.f32 %v2164_v15, %v1571_v22  ;;  %v2565_v40 = vld [vmem:[%s3170_s10] sm:$0xff]  }
 0x315   :  { %v1576_v31 = vmax.f32 %v1568_v24, %v1574_v25  ;;  %v1575_v33 = vmax.f32 %v1573_v27, 0.0  ;;  %v2566_v24 = vld [vmem:[%s3170_s10 + $0x8] sm:$0xff]   ;;  %v2567_v25 = vld [vmem:[%s3170_s10 + $0x10] sm:$0xff]   ;;  %v2568_v27 = vld [vmem:[%s3170_s10 + $0x18] sm:$0xff]  }
 0x317   :  { %v1580_v42 = vcombine.high %v1576_v31, %v1576_v31  ;;  %v1587_v34 = vrot.slane %v1576_v31, %v2962_v37  ;;  %v1577_v35 = vmax.f32 %v1569_v28, %v1575_v33  ;;  %v2569_v28 = vld [vmem:[%s3170_s10 + $0x20] sm:$0xff]   ;;  %v2570_v31 = vld [vmem:[%s3170_s10 + $0x28] sm:$0xff]   ;;  %v2571_v33 = vld [vmem:[%s3170_s10 + $0x30] sm:$0xff]  }
 0x319   :  { %v1594_v36 = vrot.slane %v1580_v42, %v2962_v37  ;;  %v1595_v41 = vcombine.high %v1587_v34, %v1587_v34  ;;  %v1622_v30 = vpack.c.bf16 %v1587_v34, %v1587_v34  ;;  %v1597_v45 = vcombine.high %v1577_v35, %v1577_v35  ;;  %v2572_v42 = vld [vmem:[%s3170_s10 + $0x38] sm:$0xff]  }
 0x31a   :  { %v1604_v38 = vrot.slane %v1577_v35, %v2962_v37  ;;  %v2575_v35 = vld [vmem:[%s3171_s13 + $0x10] sm:$0xff]  }
 0x31b   :  { %v1596_v43 = vcombine.high %v1594_v36, %v1594_v36  ;;  %v1623_v39 = vpack.c.bf16 %v1595_v41, %v1595_v41  ;;  %v1624_v44 = vpack.c.bf16 %v1594_v36, %v1594_v36  ;;  %v1671_v47 = vunpack.c.l.b16 %v1622_v30  ;;  %2485 = vmatpush3.bf16.msra.mxu1 %v2575_v35  ;;  %v2576_v36 = vld [vmem:[%s3171_s13 + $0x18] sm:$0xff]   ;;  %v2197_v41 = vld [vmem:[%s3174_s11] ss:$0 sm:$0xff] }
 0x31c   :  { %v1611_v48 = vrot.slane %v1597_v45, %v2962_v37  ;;  %v1612_v46 = vcombine.high %v1604_v38, %v1604_v38  ;;  %v1626_v32 = vpack.c.bf16 %v1604_v38, %v1604_v38  ;;  %2486 = vmatprep.subr.bf16.mxu1 %v2579_v26  ;;  %v2198_v45 = vld [vmem:[%s3175_s12] ss:$0 sm:$0xff] }
 0x31d   :  { %v1625_v49 = vpack.c.bf16 %v1596_v43, %v1596_v43  ;;  %v1672_v50 = vunpack.c.l.b16 %v1623_v39  ;;  %v1673_v51 = vunpack.c.l.b16 %v1624_v44  ;;  %v1679_v52 = vrot.slane %v1671_v47, 1 }
 0x31e   :  { %v1613_v53 = vcombine.high %v1611_v48, %v1611_v48  ;;  %v1627_v54 = vpack.c.bf16 %v1612_v46, %v1612_v46  ;;  %v1628_v55 = vpack.c.bf16 %v1611_v48, %v1611_v48  ;;  %v1675_v56 = vunpack.c.l.b16 %v1626_v32  ;;  %v2577_v32 = vld [vmem:[%s3176_s16] sm:$0xff]  }
 0x31f   :  { %v1674_v57 = vunpack.c.l.b16 %v1625_v49  ;;  %v1681_v58 = vsel %vm1680_vm8, %v1672_v50, %v1679_v52  ;;  %v1682_v59 = vrot.slane %v1673_v51, 7  ;;  %v1790_v60 = vrot.slane %v1672_v50, 7  ;;  %2487 = vmatpush3.bf16.msra.mxu1 %v2576_v36  ;;  %v2578_v49 = vld [vmem:[%s3176_s16 + $0x8] sm:$0xff]   ;;  %v2204_v50 = vld [vmem:[%s3177_s14] ss:$0 sm:$0xff] }
 0x320   :  { %v1792_v61 = vrot.slane %v1673_v51, 6  ;;  %v1629_v62 = vpack.c.bf16 %v1613_v53, %v1613_v53  ;;  %v1676_v63 = vunpack.c.l.b16 %v1627_v54  ;;  %v1677_v37 = vunpack.c.l.b16 %v1628_v55  ;;  %2492 = vmatprep.subr.bf16.mxu1 %v2579_v26  ;;  %v2205_v52 = vld [vmem:[%s3178_s15] ss:$0 sm:$0xff] }
 0x321   :  { %v1684_v0 = vsel %vm1683_vm9, %v1682_v59, %v1681_v58  ;;  %v1685_v1 = vrot.slane %v1674_v57, 6  ;;  %v1791_v2 = vsel %vm1680_vm8, %v1790_v60, %v1671_v47  ;;  %v1794_v3 = vrot.slane %v1674_v57, 5 }
 0x322   :  { %v1793_v4 = vsel %vm1683_vm9, %v1792_v61, %v1791_v2  ;;  %v1678_v5 = vunpack.c.l.b16 %v1629_v62  ;;  %v1688_v6 = vrot.slane %v1675_v56, 5  ;;  %v1796_v7 = vrot.slane %v1675_v56, 4 }
 0x323   :  { %v1691_v8 = vrot.slane %v1676_v63, 4  ;;  %v1798_v9 = vrot.slane %v1676_v63, 3  ;;  %v1687_v10 = vsel %vm1686_vm10, %v1685_v1, %v1684_v0  ;;  %v1795_v11 = vsel %vm1686_vm10, %v1794_v3, %v1793_v4 }
 0x324   :  { %v1694_v12 = vrot.slane %v1677_v37, 3  ;;  %v1800_v13 = vrot.slane %v1677_v37, 2  ;;  %v1690_v14 = vsel %vm1689_vm11, %v1688_v6, %v1687_v10  ;;  %v1797_v15 = vsel %vm1689_vm11, %v1796_v7, %v1795_v11 }
 0x325   :  { %v1693_v16 = vsel %vm1692_vm12, %v1691_v8, %v1690_v14  ;;  %v1697_v17 = vrot.slane %v1678_v5, 2  ;;  %v1799_v18 = vsel %vm1692_vm12, %v1798_v9, %v1797_v15  ;;  %v1802_v19 = vrot.slane %v1678_v5, 1 }
 0x326   :  { %v1696_v20 = vsel %vm1695_vm13, %v1694_v12, %v1693_v16  ;;  %v1801_v29 = vsel %vm1695_vm13, %v1800_v13, %v1799_v18 }
 0x327   :  { %v1699_v21 = vsel %vm1698_vm14, %v1697_v17, %v1696_v20  ;;  %v1803_v22 = vsel %vm1698_vm14, %v1802_v19, %v1801_v29 }
 0x328   :  { %v1700_v23 = vpack.c.b16 %v1699_v21, %v1699_v21  ;;  %v1804_v34 = vpack.c.b16 %v1803_v22, %v1803_v22 }
 0x32a   :  { %2457 = vmatmul.mubr.bf16.vlgmr.msra.gmra.mrb[16].mxu0 %v1700_v23 }
 0x32b   :  { %2461 = vmatpush3.bf16.msra.mxu0 %v2565_v40  ;;  %2476 = vmatprep.mubr.msk.bf16.mxu0 %vm2580_vm4, %v2579_v26 }
 0x32c   :  { %2462 = vmatprep.subr.bf16.mxu0 %v2579_v26 }
 0x32f   :  { %2463 = vmatpush3.bf16.msra.mxu0 %v2566_v24 }
 0x330   :  { %2464 = vmatprep.subr.bf16.mxu0 %v2579_v26 }
 0x333   :  { %2465 = vmatpush3.bf16.msra.mxu0 %v2567_v25 }
 0x334   :  { %2466 = vmatprep.subr.bf16.mxu0 %v2579_v26 }
 0x337   :  { %2467 = vmatpush3.bf16.msra.mxu0 %v2568_v27 }
 0x338   :  { %2468 = vmatprep.subr.bf16.mxu0 %v2579_v26 }
 0x33b   :  { %2469 = vmatpush3.bf16.msra.mxu0 %v2569_v28 }
 0x33c   :  { %2470 = vmatprep.subr.bf16.mxu0 %v2579_v26 }
 0x33f   :  { %2471 = vmatpush3.bf16.msra.mxu0 %v2570_v31 }
 0x340   :  { %2472 = vmatprep.subr.bf16.mxu0 %v2579_v26 }
 0x343   :  { %2473 = vmatpush3.bf16.msra.mxu0 %v2571_v33 }
 0x344   :  { %2474 = vmatprep.subr.bf16.mxu0 %v2579_v26 }
 0x347   :  { %2475 = vmatpush3.bf16.msra.mxu0 %v2572_v42 }
 0x34a   :  { %2477 = vmatmul.mubr.bf16.vlgmr.msra.gmra.mrb[16].mxu0 %v1804_v34 }
 0x41d   :  { %v1888_v30 = vpop.f32.mrb[16].mxu0 }
 0x41e   :  { %v1901_v38 = vmul.f32 %v2197_v41, %v1888_v30  ;;  %v2478_v43 = vpop.f32.mrb[17].mxu0 }
 0x41f   :  { %v1891_v39 = vpop.f32.mrb[18].mxu0 }
 0x420   :  { %v1909_v44 = vadd.f32 %v2198_v45, %v1901_v38  ;;  %v2479_v47 = vpop.f32.mrb[19].mxu0 }
 0x422   :  { %v1910_v48 = vmax.f32 %v1909_v44, 0.0 }
 0x424   :  { %v1911_v46 = vpack.c.bf16 %v1910_v48, %v1910_v48 }
 0x426   :  { %2489 = vmatmul.mubr.msk.bf16.vlgmr.msra.gmra.mrb[20].mxu1 %vm1169_vm7, %v1911_v46 }
 0x427   :  { %2496 = vmatprep.mubr.msk.bf16.mxu1 %vm2580_vm4, %v2579_v26  ;;  %2493 = vmatpush3.bf16.msra.mxu1 %v2577_v32 }
 0x428   :  { %2494 = vmatprep.subr.bf16.mxu1 %v2579_v26  ;;  %v2206_v26 = vld [vmem:[%s3179_s17] ss:$0 sm:$0xff] }
 0x42b   :  { %2495 = vmatpush3.bf16.msra.mxu1 %v2578_v49 }
 0x4f9   :  { %v1981_v51 = vpop.f32.mrb[20].mxu1 }
 0x4fa   :  { %v1994_v53 = vmul.f32 %v2204_v50, %v1981_v51  ;;  %v2490_v54 = vpop.f32.mrb[21].mxu1 }
 0x4fb   :  { %v1984_v55 = vpop.f32.mrb[22].mxu1 }
 0x4fc   :  { %v2002_v56 = vadd.f32 %v2205_v52, %v1994_v53  ;;  %v2491_v57 = vpop.f32.mrb[23].mxu1 }
 0x4fe   :  { %v2003_v58 = vmax.f32 %v2002_v56, 0.0 }
 0x500   :  { %v2004_v59 = vpack.c.bf16 %v2003_v58, %v2003_v58 }
 0x502   :  { %2497 = vmatmul.mubr.msk.bf16.vlgmr.msra.gmra.mrb[24].mxu1 %vm346_vm3, %v2004_v59 }
 0x5d5   :  { %v2065_v60 = vpop.f32.mrb[24].mxu1 }
 0x5d6   :  { %v2066_v61 = vadd.f32 %v2206_v26, %v2065_v60  ;;  %v2498_v62 = vpop.f32.mrb[25].mxu1 }
 0x5d7   :  { %v2068_v63 = vpop.f32.mrb[26].mxu1 }
 0x5d8   :  { %2071 = vst [vmem:[%s3180_s18] sm:$0xff] %v2066_v61  ;;  %v2499_v37 = vpop.f32.mrb[27].mxu1 }

</bundles_post_ra>
